<compile_context>
chip_gen: v5e
topology: v5e:2x2
jax: 0.10.0
libtpu: 0.0.40
codegen_flags: <defaults>
</compile_context>

<pallas_src>
import functools
import math

import jax
import jax.numpy as jnp
from jax.experimental import pallas as pl
from jax.experimental.pallas import tpu as pltpu

_EPS = 1e-5  # torch nn.LayerNorm default eps


def _layernorm(x, gamma, beta):
    mean = jnp.mean(x, axis=-1, keepdims=True)
    var = jnp.mean(jnp.square(x - mean), axis=-1, keepdims=True)
    return (x - mean) * jax.lax.rsqrt(var + _EPS) * gamma + beta


# ---------------------------------------------------------------------------
# Fused kernel (one grid step produces out[i_tile, :, :]):
#   LayerNorm(x) -> proj = xn @ (diag(gamma) wv wo) + beta wv wo       (all j)
#   -> out[i, j, :] = LayerNorm(proj[j] + x[i])   for i in this tile
# ---------------------------------------------------------------------------
def _mapper_attention_kernel(xf_ref, xt_ref, wf_ref, bproj_ref, gamma_ref,
                             beta_ref, out_ref, *, inv_d):
    g = gamma_ref[...]                                     # (1, D)
    b = beta_ref[...]                                      # (1, D)

    # -- first LayerNorm over every row j (gamma/beta folded into wf/bproj) --
    x = xf_ref[...]                                        # (B, D) f32, VMEM-resident
    mx = jnp.mean(x, axis=-1, keepdims=True)               # (B, 1)
    m2x = jnp.mean(x * x, axis=-1, keepdims=True)          # (B, 1)
    xn = (x - mx) * jax.lax.rsqrt((m2x - mx * mx) + _EPS)  # (B, D) f32

    # -- fused v_fc + out_fc (attn == 1.0 for S=1, so q/k/softmax are dead) --
    # bf16 operands for the MXU, f32 accumulation; elementwise stays f32.
    proj = jnp.dot(xn.astype(jnp.bfloat16), wf_ref[...],
                   preferred_element_type=jnp.float32) + bproj_ref[...]   # (B, D)

    mp = jnp.mean(proj, axis=-1, keepdims=True)            # (B, 1)
    m2p = jnp.mean(proj * proj, axis=-1, keepdims=True)    # (B, 1)
    pcg = (proj - mp) * g                                  # (B, D) pre-centered*gamma

    # -- residual rows of this output tile --
    xt = xt_ref[...]                                       # (TILE_I, D)
    mxt = jnp.mean(xt, axis=-1, keepdims=True)             # (TILE_I, 1)
    m2xt = jnp.mean(xt * xt, axis=-1, keepdims=True)       # (TILE_I, 1)
    xcg = (xt - mxt) * g                                   # (TILE_I, D)

    # -- decomposed second-LN statistics for y[i,j,:] = proj[j] + x[i] --
    #   mean_ij   = mean(proj_j) + mean(x_i)
    #   E[y^2]_ij = E[proj_j^2] + E[x_i^2] + 2 * <x_i, proj_j> / D
    cross = jax.lax.dot_general(                           # (TILE_I, B)
        xt.astype(jnp.bfloat16), proj.astype(jnp.bfloat16),
        (((1,), (1,)), ((), ())), preferred_element_type=jnp.float32)
    mean_ij = mxt[:, None, :] + mp[None, :, :]             # (TILE_I, B, 1)
    ey2_ij = m2xt[:, None, :] + m2p[None, :, :] + (2.0 * inv_d) * cross[:, :, None]
    inv_ij = jax.lax.rsqrt(ey2_ij - mean_ij * mean_ij + _EPS)   # (TILE_I, B, 1)

    # -- epilogue: 3 VPU ops per element of the (TILE_I, B, D) slab --
    out_ref[...] = (xcg[:, None, :] + pcg[None, :, :]) * inv_ij + b[None, :, :]


# ---------------------------------------------------------------------------
# Offline (once-per-model) weight fusion -- keep OUT of the per-call path.
# ---------------------------------------------------------------------------
def fuse_params(params):
    D = params["wv"].shape[0]
    w = params["wv"] @ params["wo"]                              # v_fc . out_fc, (D, D)
    return {
        "wf": (params["gamma"][:, None] * w).astype(jnp.bfloat16),      # LN1 gamma folded
        "bproj": (params["beta"] @ w).reshape(1, D).astype(jnp.float32),  # LN1 beta folded
        "gamma": params["gamma"].reshape(1, D).astype(jnp.float32),
        "beta": params["beta"].reshape(1, D).astype(jnp.float32),
    }


def _pick_tile_i(b):
    # Sublane dim of the (TILE_I, D) residual block must be a multiple of 8 or
    # the full extent.  TILE_I=8 also keeps the per-step output slab at
    # 8*B*D*4 bytes (plus double-buffering), well inside v7x's 64 MiB VMEM.
    return 8 if (b % 8 == 0) else b


# ---------------------------------------------------------------------------
# Wrapper
# ---------------------------------------------------------------------------
@jax.jit
def mapper_attention_forward(x, fused):
    """x: (B, 1, D) float32, fused = fuse_params(params). Returns (1, B, B, D)."""
    B, S, D = x.shape
    assert S == 1, "reference forward only works for seq length 1 (CLIP features)"

    x2 = x.reshape(B, D).astype(jnp.float32)
    tile_i = _pick_tile_i(B)
    ntiles = B // tile_i

    # Advisory cost so XLA can schedule/overlap around the custom call.
    cost = pl.CostEstimate(
        flops=2 * ntiles * B * D * D + 6 * B * B * D,
        transcendentals=B * B + 2 * B * ntiles,
        bytes_accessed=2 * B * D * 4 + D * D * 2 + 3 * D * 4 + B * B * D * 4,
    )

    # NOTE: if many CLIP batches are processed, stack them into one call
    # (extra slab grid axis, weight index_map kept constant) to amortize the
    # weight DMA and fill the 256x256 / 128x128 MXU.
    out3 = pl.pallas_call(
        functools.partial(_mapper_attention_kernel, inv_d=1.0 / D),
        out_shape=jax.ShapeDtypeStruct((B, B, D), jnp.float32),
        grid=(ntiles,),
        in_specs=[
            pl.BlockSpec((B, D), lambda i: (0, 0)),        # full x (VMEM-resident)
            pl.BlockSpec((tile_i, D), lambda i: (i, 0)),   # residual rows of this tile
            pl.BlockSpec((D, D), lambda i: (0, 0)),        # fused bf16 weight (resident)
            pl.BlockSpec((1, D), lambda i: (0, 0)),        # fused bias
            pl.BlockSpec((1, D), lambda i: (0, 0)),        # gamma (2nd LayerNorm)
            pl.BlockSpec((1, D), lambda i: (0, 0)),        # beta  (2nd LayerNorm)
        ],
        out_specs=pl.BlockSpec((tile_i, B, D), lambda i: (i, 0, 0)),
        compiler_params=pltpu.CompilerParams(
            dimension_semantics=("parallel",)),            # megacore on v7x
        cost_estimate=cost,
    )(x2, x2, fused["wf"], fused["bproj"], fused["gamma"], fused["beta"])

    # torch's view/permute + broadcasting yields a leading singleton dim.
    return out3.reshape(1, B, B, D)


# ---------------------------------------------------------------------------
# Deterministic parameter init (shapes from mapper_attention.__init__)
# ---------------------------------------------------------------------------
def init_params(key, input_dim=512, embed_dim=None):
    if embed_dim is None:
        embed_dim = input_dim
    kq, kk, kv, ko = jax.random.split(key, 4)
    b_in = 1.0 / math.sqrt(input_dim)
    b_emb = 1.0 / math.sqrt(embed_dim)
    # weights stored pre-transposed: y = x @ W  (torch nn.Linear: y = x @ weight.T)
    return {
        "wq": jax.random.uniform(kq, (input_dim, embed_dim), jnp.float32, -b_in, b_in),
        "wk": jax.random.uniform(kk, (input_dim, embed_dim), jnp.float32, -b_in, b_in),
        "wv": jax.random.uniform(kv, (input_dim, embed_dim), jnp.float32, -b_in, b_in),
        "wo": jax.random.uniform(ko, (embed_dim, input_dim), jnp.float32, -b_emb, b_emb),
        "gamma": jnp.ones((input_dim,), jnp.float32),   # nn.LayerNorm default
        "beta": jnp.zeros((input_dim,), jnp.float32),
    }


# ---------------------------------------------------------------------------
# Pure-JAX reference that mirrors the torch forward op-for-op (incl. q/k path)
# ---------------------------------------------------------------------------
def torch_reference(x, p):
    B, S, D = x.shape
    H = 1
    E = p["wq"].shape[1]
    Dh = E // H
    residual = x
    xn = _layernorm(x, p["gamma"], p["beta"])
    q = (xn @ p["wq"]).reshape(B, S, H, Dh).transpose(0, 2, 1, 3)
    k = (xn @ p["wk"]).reshape(B, S, H, Dh).transpose(0, 2, 1, 3)
    v = (xn @ p["wv"]).reshape(B, S, H, Dh)          # note: v is NOT permuted
    k = k.transpose(0, 2, 1, 3)                      # note: k permuted twice
    attn = jnp.matmul(q, jnp.swapaxes(k, -2, -1)) / math.sqrt(Dh)
    attn = jax.nn.softmax(attn, axis=2)
    out = jnp.matmul(attn, v)
    out = out.reshape(H, B, S, Dh).transpose(0, 2, 1, 3)
    out = out @ p["wo"]
    out = out + residual                             # broadcasts to (1, B, B, D)
    return _layernorm(out, p["gamma"], p["beta"])


if __name__ == "__main__":
    # CLIP-feature shape the module documents: (batch, 1, 512).
    # B=16 so the output grid actually has 2 tiles (TILE_I=8).
    B, S, D = 16, 1, 512
    key = jax.random.PRNGKey(0)
    kx, kp = jax.random.split(key)
    x = jax.random.normal(kx, (B, S, D), jnp.float32)
    params = init_params(kp, input_dim=D)
    fused = fuse_params(params)          # once-per-model, hoisted out of forward

    out = mapper_attention_forward(x, fused)
    out = jax.block_until_ready(out)

    ref = torch_reference(x, params)
    assert out.shape == (1, B, B, D), out.shape
    max_err = float(jnp.max(jnp.abs(out - ref)))
    # bf16 MXU path (proj + cross term) vs f32 reference -> a few 1e-3 abs err.
    assert max_err < 2e-2, f"mismatch vs reference, max abs err = {max_err}"
    print("KERNEL_OK")
</pallas_src>

<mosaic_0001>
module attributes {stable_mosaic.version = 11 : i64} {
  func.func @_mapper_attention_kernel(%arg0: i32, %arg1: memref<16x512xf32, #tpu.memory_space<vmem>>, %arg2: memref<8x512xf32, #tpu.memory_space<vmem>>, %arg3: memref<512x512xbf16, #tpu.memory_space<vmem>>, %arg4: memref<1x512xf32, #tpu.memory_space<vmem>>, %arg5: memref<1x512xf32, #tpu.memory_space<vmem>>, %arg6: memref<1x512xf32, #tpu.memory_space<vmem>>, %arg7: memref<8x16x512xf32, #tpu.memory_space<vmem>>) attributes {dimension_semantics = [#tpu.dimension_semantics<parallel>], iteration_bounds = array<i64: 2>, scalar_prefetch = 0 : i64, scratch_operands = 0 : i64, tpu.core_type = #tpu.core_type<tc>, window_params = [{pipeline_mode = #tpu.pipeline_mode<synchronous>, transform_indices = @transform_0, window_bounds = array<i64: 16, 512>}, {transform_indices = @transform_1, window_bounds = array<i64: 8, 512>}, {pipeline_mode = #tpu.pipeline_mode<synchronous>, transform_indices = @transform_2, window_bounds = array<i64: 512, 512>}, {pipeline_mode = #tpu.pipeline_mode<synchronous>, transform_indices = @transform_3, window_bounds = array<i64: 1, 512>}, {pipeline_mode = #tpu.pipeline_mode<synchronous>, transform_indices = @transform_4, window_bounds = array<i64: 1, 512>}, {pipeline_mode = #tpu.pipeline_mode<synchronous>, transform_indices = @transform_5, window_bounds = array<i64: 1, 512>}, {transform_indices = @transform_6, window_bounds = array<i64: 8, 16, 512>}]} {
    %c0 = arith.constant 0 : index
    %c0_0 = arith.constant 0 : index
    %0 = vector.load %arg5[%c0, %c0_0] : memref<1x512xf32, #tpu.memory_space<vmem>>, vector<1x512xf32>
    %c0_1 = arith.constant 0 : index
    %c0_2 = arith.constant 0 : index
    %1 = vector.load %arg6[%c0_1, %c0_2] : memref<1x512xf32, #tpu.memory_space<vmem>>, vector<1x512xf32>
    %c0_3 = arith.constant 0 : index
    %c0_4 = arith.constant 0 : index
    %2 = vector.load %arg1[%c0_3, %c0_4] : memref<16x512xf32, #tpu.memory_space<vmem>>, vector<16x512xf32>
    %cst = arith.constant dense<0.000000e+00> : vector<16xf32>
    %3 = vector.multi_reduction <add>, %2, %cst [1] : vector<16x512xf32> to vector<16xf32>
    %4 = vector.shape_cast %3 : vector<16xf32> to vector<16x1xf32>
    %cst_5 = arith.constant 5.120000e+02 : f32
    %5 = vector.broadcast %cst_5 : f32 to vector<16x1xf32>
    %6 = arith.divf %4, %5 : vector<16x1xf32>
    %7 = arith.mulf %2, %2 : vector<16x512xf32>
    %cst_6 = arith.constant dense<0.000000e+00> : vector<16xf32>
    %8 = vector.multi_reduction <add>, %7, %cst_6 [1] : vector<16x512xf32> to vector<16xf32>
    %9 = vector.shape_cast %8 : vector<16xf32> to vector<16x1xf32>
    %cst_7 = arith.constant 5.120000e+02 : f32
    %10 = vector.broadcast %cst_7 : f32 to vector<16x1xf32>
    %11 = arith.divf %9, %10 : vector<16x1xf32>
    %12 = vector.broadcast %6 : vector<16x1xf32> to vector<16x512xf32>
    %13 = arith.subf %2, %12 : vector<16x512xf32>
    %14 = arith.mulf %6, %6 : vector<16x1xf32>
    %15 = arith.subf %11, %14 : vector<16x1xf32>
    %cst_8 = arith.constant 9.99999974E-6 : f32
    %16 = vector.broadcast %cst_8 : f32 to vector<16x1xf32>
    %17 = arith.addf %15, %16 : vector<16x1xf32>
    %18 = math.rsqrt %17 : vector<16x1xf32>
    %19 = vector.broadcast %18 : vector<16x1xf32> to vector<16x512xf32>
    %20 = arith.mulf %13, %19 : vector<16x512xf32>
    %21 = arith.truncf %20 : vector<16x512xf32> to vector<16x512xbf16>
    %c0_9 = arith.constant 0 : index
    %c0_10 = arith.constant 0 : index
    %22 = vector.load %arg3[%c0_9, %c0_10] : memref<512x512xbf16, #tpu.memory_space<vmem>>, vector<512x512xbf16>
    %cst_11 = arith.constant dense<0.000000e+00> : vector<16x512xf32>
    %23 = tpu.matmul %21, %22, %cst_11 {dimension_numbers = #tpu.dot_dimension_numbers<[1], [0], [0], [1], [0, 0, 1, 1], [], []>} : vector<16x512xbf16>, vector<512x512xbf16>, vector<16x512xf32> -> vector<16x512xf32>
    %c0_12 = arith.constant 0 : index
    %c0_13 = arith.constant 0 : index
    %24 = vector.load %arg4[%c0_12, %c0_13] : memref<1x512xf32, #tpu.memory_space<vmem>>, vector<1x512xf32>
    %25 = vector.broadcast %24 : vector<1x512xf32> to vector<16x512xf32>
    %26 = arith.addf %23, %25 : vector<16x512xf32>
    %cst_14 = arith.constant dense<0.000000e+00> : vector<16xf32>
    %27 = vector.multi_reduction <add>, %26, %cst_14 [1] : vector<16x512xf32> to vector<16xf32>
    %28 = vector.shape_cast %27 : vector<16xf32> to vector<16x1xf32>
    %cst_15 = arith.constant 5.120000e+02 : f32
    %29 = vector.broadcast %cst_15 : f32 to vector<16x1xf32>
    %30 = arith.divf %28, %29 : vector<16x1xf32>
    %31 = arith.mulf %26, %26 : vector<16x512xf32>
    %cst_16 = arith.constant dense<0.000000e+00> : vector<16xf32>
    %32 = vector.multi_reduction <add>, %31, %cst_16 [1] : vector<16x512xf32> to vector<16xf32>
    %33 = vector.shape_cast %32 : vector<16xf32> to vector<16x1xf32>
    %cst_17 = arith.constant 5.120000e+02 : f32
    %34 = vector.broadcast %cst_17 : f32 to vector<16x1xf32>
    %35 = arith.divf %33, %34 : vector<16x1xf32>
    %36 = vector.broadcast %30 : vector<16x1xf32> to vector<16x512xf32>
    %37 = arith.subf %26, %36 : vector<16x512xf32>
    %38 = vector.broadcast %0 : vector<1x512xf32> to vector<16x512xf32>
    %39 = arith.mulf %37, %38 : vector<16x512xf32>
    %c0_18 = arith.constant 0 : index
    %c0_19 = arith.constant 0 : index
    %40 = vector.load %arg2[%c0_18, %c0_19] : memref<8x512xf32, #tpu.memory_space<vmem>>, vector<8x512xf32>
    %cst_20 = arith.constant dense<0.000000e+00> : vector<8xf32>
    %41 = vector.multi_reduction <add>, %40, %cst_20 [1] : vector<8x512xf32> to vector<8xf32>
    %42 = vector.shape_cast %41 : vector<8xf32> to vector<8x1xf32>
    %cst_21 = arith.constant 5.120000e+02 : f32
    %43 = vector.broadcast %cst_21 : f32 to vector<8x1xf32>
    %44 = arith.divf %42, %43 : vector<8x1xf32>
    %45 = arith.mulf %40, %40 : vector<8x512xf32>
    %cst_22 = arith.constant dense<0.000000e+00> : vector<8xf32>
    %46 = vector.multi_reduction <add>, %45, %cst_22 [1] : vector<8x512xf32> to vector<8xf32>
    %47 = vector.shape_cast %46 : vector<8xf32> to vector<8x1xf32>
    %cst_23 = arith.constant 5.120000e+02 : f32
    %48 = vector.broadcast %cst_23 : f32 to vector<8x1xf32>
    %49 = arith.divf %47, %48 : vector<8x1xf32>
    %50 = vector.broadcast %44 : vector<8x1xf32> to vector<8x512xf32>
    %51 = arith.subf %40, %50 : vector<8x512xf32>
    %52 = vector.broadcast %0 : vector<1x512xf32> to vector<8x512xf32>
    %53 = arith.mulf %51, %52 : vector<8x512xf32>
    %54 = arith.truncf %40 : vector<8x512xf32> to vector<8x512xbf16>
    %55 = arith.truncf %26 : vector<16x512xf32> to vector<16x512xbf16>
    %cst_24 = arith.constant dense<0.000000e+00> : vector<8x16xf32>
    %56 = tpu.matmul %54, %55, %cst_24 {dimension_numbers = #tpu.dot_dimension_numbers<[1], [1], [0], [0], [0, 0, 1, 0], [], []>} : vector<8x512xbf16>, vector<16x512xbf16>, vector<8x16xf32> -> vector<8x16xf32>
    %57 = vector.shape_cast %44 : vector<8x1xf32> to vector<8x1x1xf32>
    %58 = vector.shape_cast %30 : vector<16x1xf32> to vector<1x16x1xf32>
    %59 = vector.broadcast %57 : vector<8x1x1xf32> to vector<8x16x1xf32>
    %60 = vector.broadcast %58 : vector<1x16x1xf32> to vector<8x16x1xf32>
    %61 = arith.addf %59, %60 : vector<8x16x1xf32>
    %62 = vector.shape_cast %49 : vector<8x1xf32> to vector<8x1x1xf32>
    %63 = vector.shape_cast %35 : vector<16x1xf32> to vector<1x16x1xf32>
    %64 = vector.broadcast %62 : vector<8x1x1xf32> to vector<8x16x1xf32>
    %65 = vector.broadcast %63 : vector<1x16x1xf32> to vector<8x16x1xf32>
    %66 = arith.addf %64, %65 : vector<8x16x1xf32>
    %67 = vector.shape_cast %56 : vector<8x16xf32> to vector<8x16x1xf32>
    %cst_25 = arith.constant 3.906250e-03 : f32
    %68 = vector.broadcast %cst_25 : f32 to vector<8x16x1xf32>
    %69 = arith.mulf %68, %67 : vector<8x16x1xf32>
    %70 = arith.addf %66, %69 : vector<8x16x1xf32>
    %71 = arith.mulf %61, %61 : vector<8x16x1xf32>
    %72 = arith.subf %70, %71 : vector<8x16x1xf32>
    %cst_26 = arith.constant 9.99999974E-6 : f32
    %73 = vector.broadcast %cst_26 : f32 to vector<8x16x1xf32>
    %74 = arith.addf %72, %73 : vector<8x16x1xf32>
    %75 = math.rsqrt %74 : vector<8x16x1xf32>
    %76 = vector.shape_cast %53 : vector<8x512xf32> to vector<8x1x512xf32>
    %77 = vector.shape_cast %39 : vector<16x512xf32> to vector<1x16x512xf32>
    %78 = vector.broadcast %76 : vector<8x1x512xf32> to vector<8x16x512xf32>
    %79 = vector.broadcast %77 : vector<1x16x512xf32> to vector<8x16x512xf32>
    %80 = arith.addf %78, %79 : vector<8x16x512xf32>
    %81 = vector.broadcast %75 : vector<8x16x1xf32> to vector<8x16x512xf32>
    %82 = arith.mulf %80, %81 : vector<8x16x512xf32>
    %83 = vector.shape_cast %1 : vector<1x512xf32> to vector<1x1x512xf32>
    %84 = vector.broadcast %83 : vector<1x1x512xf32> to vector<8x16x512xf32>
    %85 = arith.addf %82, %84 : vector<8x16x512xf32>
    %c0_27 = arith.constant 0 : index
    %c0_28 = arith.constant 0 : index
    %c0_29 = arith.constant 0 : index
    %86 = vector.load %arg7[%c0_27, %c0_28, %c0_29] : memref<8x16x512xf32, #tpu.memory_space<vmem>>, vector<8x16x512xf32>
    tpu.vector_store %arg7[%c0_27, %c0_28, %c0_29], %85 {strides = array<i32>} : memref<8x16x512xf32, #tpu.memory_space<vmem>>, vector<8x16x512xf32>,
    return
  }
  func.func @transform_0(%arg0: i32) -> (i32, i32) {
    %c0_i32 = arith.constant 0 : i32
    %c0_i32_0 = arith.constant 0 : i32
    %c0_i32_1 = arith.constant 0 : i32
    return %c0_i32, %c0_i32_0 : i32, i32
  }
  func.func @transform_1(%arg0: i32) -> (i32, i32) {
    %c0_i32 = arith.constant 0 : i32
    %c0_i32_0 = arith.constant 0 : i32
    return %arg0, %c0_i32 : i32, i32
  }
  func.func @transform_2(%arg0: i32) -> (i32, i32) {
    %c0_i32 = arith.constant 0 : i32
    %c0_i32_0 = arith.constant 0 : i32
    %c0_i32_1 = arith.constant 0 : i32
    return %c0_i32, %c0_i32_0 : i32, i32
  }
  func.func @transform_3(%arg0: i32) -> (i32, i32) {
    %c0_i32 = arith.constant 0 : i32
    %c0_i32_0 = arith.constant 0 : i32
    %c0_i32_1 = arith.constant 0 : i32
    return %c0_i32, %c0_i32_0 : i32, i32
  }
  func.func @transform_4(%arg0: i32) -> (i32, i32) {
    %c0_i32 = arith.constant 0 : i32
    %c0_i32_0 = arith.constant 0 : i32
    %c0_i32_1 = arith.constant 0 : i32
    return %c0_i32, %c0_i32_0 : i32, i32
  }
  func.func @transform_5(%arg0: i32) -> (i32, i32) {
    %c0_i32 = arith.constant 0 : i32
    %c0_i32_0 = arith.constant 0 : i32
    %c0_i32_1 = arith.constant 0 : i32
    return %c0_i32, %c0_i32_0 : i32, i32
  }
  func.func @transform_6(%arg0: i32) -> (i32, i32, i32) {
    %c0_i32 = arith.constant 0 : i32
    %c0_i32_0 = arith.constant 0 : i32
    %c0_i32_1 = arith.constant 0 : i32
    return %arg0, %c0_i32, %c0_i32_0 : i32, i32, i32
  }
}

</mosaic_0001>

<bundles_post_ra>
// kernel: mapper_attention_forward.1
= control target key start
LH: loop header
LB: loop body
LE: loop exit
PB: predicated region body
PF: predicated region fallthrough
CT: control target
= control target key end

     0   :  { %11 = vsyncpa [#allocation3], 0  ;;  %s4671_s0 = inlined_call_operand.vmem [shape: f32[16,512], index: 0, kind: input, shape index: {}, may-alias: {0,1}]   ;;  %s4672_s1 = inlined_call_operand.vmem [shape: f32[16,512], index: 1, kind: input, shape index: {}, may-alias: {0,1}]   ;;  %s4673_s2 = inlined_call_operand.hbm [shape: bf16[512,512], index: 2, kind: input, shape index: {}]   ;;  %s4674_s3 = inlined_call_operand.vmem [shape: f32[1,512], index: 3, kind: input, shape index: {}]   ;;  %s4675_s4 = inlined_call_operand.vmem [shape: f32[1,512], index: 4, kind: input, shape index: {}]   ;;  %s4676_s5 = inlined_call_operand.vmem [shape: f32[1,512], index: 5, kind: input, shape index: {}]   ;;  %s4677_s6 = inlined_call_operand.hbm [shape: f32[16,16,512], index: 6, kind: output, shape index: {}]  }
   0x1   :  { %12 = vsyncpa [#allocation4], 0 }
   0x2   :  { %14 = vsyncpa [#allocation4 + $0x1], 0  ;;  %s3294_s21 = smov 0   ;;  %s3296_s22 = smov 0  }
   0x3   :  { %s3298_s23 = smov 0   ;;  %s3300_s24 = smov 0  }
   0x4 LB: > { %s3315_s25 = sadd.s32 4294967295, %s3251_s24   ;;  %s2395_s26 = sadd.s32 4294967294, %s3251_s24   ;;  %s3251_s24 = sphi %s3300_s24, %s4867_s24   ;;  %s3247_s23 = sphi %s3298_s23, %s4866_s23   ;;  %s3243_s22 = sphi %s3296_s22, %s4865_s22   ;;  %s3239_s21 = sphi %s3294_s21, %s4864_s21  }
   0x5   : > { %s3319_s27 = sadd.s32 1, %s3251_s24   ;;  %s158_s28 = sadd.s32 1, %s3247_s23 }
   0x6   : > { %s155_s29 = ssub.s32 %s3251_s24, %s3319_s27  ;;  %p168_p0 = scmp.ne.s32.totalorder %s3247_s23, %s3243_s22 }
   0x7   : > { %p156_p1 = scmp.eq.s32.totalorder %s155_s29, 0  ;;  %p169_p2 = scmp.eq.s32.totalorder %s3315_s25, 1 }
   0x8   : > { %p174_p3 = scmp.ne.s32.totalorder %s3243_s22, %s3239_s21  ;;  %p175_p4 = scmp.eq.s32.totalorder %s2395_s26, 1 }
   0x9   : > { %s3330_s30 = scalar_select %p156_p1, %s3247_s23, %s158_s28  }
   0xa   : > { %p3332_p5 = por %p169_p2, %p168_p0  ;;  %p3336_p6 = por %p175_p4, %p174_p3 }
   0xb   : > { %p2396_p7 = scmp.ge.s32.totalorder %s3251_s24, 1  ;;  %p182_p8 = scmp.lt.s32.totalorder %s3251_s24, 3 }
   0xc   : > { %p3067_p9 = scmp.eq.s32.totalorder %s3315_s25, 0  ;;  %s196_s11 = sshll.u32 %s4673_s2, 4  ;;  %s197_s11 = int_to_ptr.hbm [resolvable:$true] %s196_s11 }
   0xd   : > { %p183_p10 = pnand %p2396_p7, %p182_p8  ;;  %s3253_s12 = smov [#allocation2]  }
   0xe   : > { %s198_s13 = sshll.u32 %s3253_s12, 4  ;;  %s3254_s14 = smov 256   ;;  %s199_s13 = int_to_ptr.vmem [resolvable:$true] %s198_s13 }
   0xf   : > { %p3059_p11 = pneg %p183_p10  ;;  %s3255_s15 = smov 16  }
  0x10   : > { %231 = sbr.rel (%p183_p10) target bundleno = 763 (0x2fb), region = 44 }
  0x11   : > { %p3060_p12 = pnand %p3067_p9, %p3059_p11 }
  0x13   : > { %3062 = dma.hbm_to_vmem [thread:$0]  (!%p3060_p12), %s197_s11, 16384, %s199_s13, [#allocation3], %s3254_s14, %s3254_s14, %s3255_s15  }
  0x15   : > { %3230 = dma.done.wait (%p3067_p9), [#allocation3], 16384  }
  0x16   : > { %3232 = vsyncadd (%p3067_p9), [#allocation3], 4294950912  ;;  %v3355_v0 = vld [vmem:[%s4671_s0] sm:$0xff]  ;;  %v3360_v1 = vld [vmem:[%s4671_s0 + $0x8] sm:$0xff]  ;;  %p262_p13 = scmp.lt.s32.totalorder %s3315_s25, 1  ;;  %vm1960_vm7 = vcmask 1046528  }
  0x17   : > { %v3365_v2 = vld [vmem:[%s4671_s0 + $0x10] sm:$0xff]  ;;  %v3370_v3 = vld [vmem:[%s4671_s0 + $0x18] sm:$0xff]  ;;  %v279_v4 = vadd.f32 %v3360_v1, %v3355_v0  ;;  %v298_v5 = vmul.f32 %v3355_v0, %v3355_v0  ;;  %v299_v6 = vmul.f32 %v3360_v1, %v3360_v1  ;;  %v3383_v8 = vld [vmem:[%s4671_s0 + $0x20] sm:$0xff]  ;;  %vm1934_vm8 = vcmask 1041409   ;;  %s259_s13 = sand.u32 1, %s3243_s22   ;;  %s3052_s16 = sshll.u32 %s3315_s25, 9 }
  0x18   : > { %v300_v7 = vmul.f32 %v3365_v2, %v3365_v2  ;;  %v3388_v9 = vld [vmem:[%s4671_s0 + $0x28] sm:$0xff]  ;;  %v3393_v10 = vld [vmem:[%s4671_s0 + $0x30] sm:$0xff]  ;;  %v302_v12 = vmul.f32 %v3383_v8, %v3383_v8  ;;  %v2518_v14 = vld [vmem:[#allocation2 + $0xe0] sm:$0xf]  ;;  %v301_v16 = vmul.f32 %v3370_v3, %v3370_v3  ;;  %s263_s19 = scalar_select %p262_p13, %s3315_s25, 1  ;;  %vm1972_vm9 = vcmask 1046529  }
  0x19   : > { %v284_v11 = vadd.f32 %v3388_v9, %v3383_v8  ;;  %v303_v13 = vmul.f32 %v3388_v9, %v3388_v9  ;;  %v280_v15 = vadd.f32 %v279_v4, %v3365_v2  ;;  %v306_v17 = vadd.f32 %v299_v6, %v298_v5  ;;  %v2953_v18 = vld [vmem:[#allocation2 + $0xec] sm:$0xf0]  ;;  %v2646_v19 = vld [vmem:[#allocation2 + $0x1e0] sm:$0xf]  ;;  %v3407_v21 = vld [vmem:[%s4671_s0 + $0x38] sm:$0xff]  ;;  %s2401_s14 = sshll.u32 %s259_s13, 9  ;;  %s2317_s18 = scalar_lea.hbm %s4677_s6, %s3052_s16 }
  0x1a   : > { %v2985_v20 = vld [vmem:[#allocation2 + $0x1ec] sm:$0xf0]  ;;  %v304_v22 = vmul.f32 %v3393_v10, %v3393_v10  ;;  %v2519_v23 = vor.u32 %v2953_v18, %v2518_v14  ;;  %v2774_v25 = vld [vmem:[#allocation2 + $0x2e0] sm:$0xf]  ;;  %v305_v51 = vmul.f32 %v3407_v21, %v3407_v21  ;;  %s2922_s20 = sshll.u32 %s263_s19, 5  ;;  %vm1936_vm10 = vcmask 1043459  }
  0x1b   : > { %v2647_v24 = vor.u32 %v2985_v20, %v2646_v19  ;;  %v3017_v26 = vld [vmem:[#allocation2 + $0x2ec] sm:$0xf0]  ;;  %v2902_v27 = vld [vmem:[#allocation2 + $0x3e0] sm:$0xf]  ;;  %v281_v28 = vadd.f32 %v280_v15, %v3370_v3  ;;  %v307_v29 = vadd.f32 %v306_v17, %v300_v7  ;;  %v311_v30 = vadd.f32 %v303_v13, %v302_v12  ;;  %s266_s29 = scalar_lea.vmem %s4672_s1, %s2922_s20  ;;  %s4181_s15 = scalar_lea.vmem [#allocation5], %s2401_s14 }
  0x1c   : > { %v2775_v31 = vor.u32 %v3017_v26, %v2774_v25  ;;  %v3049_v32 = vld [vmem:[#allocation2 + $0x3ec] sm:$0xf0]  ;;  %v2502_v33 = vld [vmem:[#allocation2 + $0xc0] sm:$0xf]  ;;  %v285_v35 = vadd.f32 %v284_v11, %v3393_v10  ;;  %1142 = vmatpush.bf16.msra.mxu0 %v2519_v23  ;;  %vm1928_vm11 = vcmask 1040384   ;;  %vm1930_vm12 = vcmask 1042434  }
  0x1d   : > { %v2949_v34 = vld [vmem:[#allocation2 + $0xcc] sm:$0xf0]  ;;  %1156 = vmatpush.bf16.msra.mxu1 %v2647_v24  ;;  %v2903_v36 = vor.u32 %v3049_v32, %v2902_v27  ;;  %v2630_v37 = vld [vmem:[#allocation2 + $0x1c0] sm:$0xf]  ;;  %282 = vadd.xlane.f32.xlu0 %v281_v28  ;;  %v308_v40 = vadd.f32 %v307_v29, %v301_v16  ;;  %v312_v52 = vadd.f32 %v311_v30, %v304_v22  ;;  %vm1932_vm13 = vcmask 1041408   ;;  %s2318_s19 = sshll.u32 %s4181_s15, 4  ;;  %s2319_s19 = int_to_ptr.vmem [resolvable:$true] %s2318_s19 }
  0x1e   : > { %v2981_v38 = vld [vmem:[#allocation2 + $0x1cc] sm:$0xf0]  ;;  %v2758_v39 = vld [vmem:[#allocation2 + $0x2c0] sm:$0xf]  ;;  %1170 = vmatpush.bf16.msra.mxu2 %v2775_v31  ;;  %v2503_v41 = vor.u32 %v2949_v34, %v2502_v33  ;;  %v286_v61 = vadd.f32 %v285_v35, %v3407_v21  ;;  %vm1938_vm14 = vcmask 1042433   ;;  %vm1942_vm15 = vcmask 1044484  }
  0x1f   : > { %v2631_v42 = vor.u32 %v2981_v38, %v2630_v37  ;;  %v3013_v43 = vld [vmem:[#allocation2 + $0x2cc] sm:$0xf0]  ;;  %v2886_v44 = vld [vmem:[#allocation2 + $0x3c0] sm:$0xf]  ;;  %1184 = vmatpush.bf16.msra.mxu3 %v2903_v36  ;;  %309 = vadd.xlane.f32.xlu1 %v308_v40  ;;  %v313_v12 = vadd.f32 %v312_v52, %v305_v51  ;;  %s2320_s20 = sshll.u32 %s2317_s18, 4  ;;  %s2305_s26 = scalar_lea.sflag [#allocation4], %s259_s13  ;;  %s2321_s20 = int_to_ptr.hbm [resolvable:$true] %s2320_s20 }
  0x20   : > { %v3045_v45 = vld [vmem:[#allocation2 + $0x3cc] sm:$0xf0]  ;;  %v2759_v46 = vor.u32 %v3013_v43, %v2758_v39  ;;  %v2486_v48 = vld [vmem:[#allocation2 + $0xa0] sm:$0xf]  ;;  %1143 = vmatpush.bf16.msra.mxu0 %v2503_v41  ;;  %s3199_s28 = sshra.s32 %s2321_s20, 4  ;;  %s3205_s11 = scalar_lea.hbm %s4677_s6, 1024  ;;  %s3200_s28 = int_to_ptr.hbm [resolvable:$true] %s3199_s28 }
  0x21   : > { %v2887_v47 = vor.u32 %v3045_v45, %v2886_v44  ;;  %v2945_v49 = vld [vmem:[#allocation2 + $0xac] sm:$0xf0]  ;;  %v2614_v50 = vld [vmem:[#allocation2 + $0x1a0] sm:$0xf]  ;;  %1157 = vmatpush.bf16.msra.mxu1 %v2631_v42  ;;  %p3206_p3 = scmp.lt.s32.totalorder %s3200_s28, %s4677_s6 }
  0x22   : > { %v2977_v53 = vld [vmem:[#allocation2 + $0x1ac] sm:$0xf0]  ;;  %v2742_v54 = vld [vmem:[#allocation2 + $0x2a0] sm:$0xf]  ;;  %v2487_v56 = vor.u32 %v2945_v49, %v2486_v48  ;;  %1171 = vmatpush.bf16.msra.mxu2 %v2759_v46 }
  0x23   : > { %v3009_v55 = vld [vmem:[#allocation2 + $0x2ac] sm:$0xf0]  ;;  %v2615_v57 = vor.u32 %v2977_v53, %v2614_v50  ;;  %v2870_v58 = vld [vmem:[#allocation2 + $0x3a0] sm:$0xf]  ;;  %1185 = vmatpush.bf16.msra.mxu3 %v2887_v47 }
  0x24   : > { %v3041_v59 = vld [vmem:[#allocation2 + $0x3ac] sm:$0xf0]  ;;  %v2470_v60 = vld [vmem:[#allocation2 + $0x80] sm:$0xf]  ;;  %v2743_v62 = vor.u32 %v3009_v55, %v2742_v54  ;;  %1144 = vmatpush.bf16.msra.mxu0 %v2487_v56  ;;  %v3256_v55 = vmov 512.0  }
  0x25   : > { %v2941_v63 = vld [vmem:[#allocation2 + $0x8c] sm:$0xf0]  ;;  %v2598_v4 = vld [vmem:[#allocation2 + $0x180] sm:$0xf]  ;;  %v2871_v6 = vor.u32 %v3041_v59, %v2870_v58  ;;  %1158 = vmatpush.bf16.msra.mxu1 %v2615_v57  ;;  %287 = vadd.xlane.f32.xlu0 %v286_v61  ;;  %3117 = vrcp.f32 %v3256_v55 }
  0x26   : > { %v2973_v5 = vld [vmem:[#allocation2 + $0x18c] sm:$0xf0]  ;;  %v2726_v7 = vld [vmem:[#allocation2 + $0x280] sm:$0xf]  ;;  %v2471_v15 = vor.u32 %v2941_v63, %v2470_v60  ;;  %1172 = vmatpush.bf16.msra.mxu2 %v2743_v62 }
  0x27   : > { %v3005_v11 = vld [vmem:[#allocation2 + $0x28c] sm:$0xf0]  ;;  %v2854_v13 = vld [vmem:[#allocation2 + $0x380] sm:$0xf]  ;;  %v2599_v16 = vor.u32 %v2973_v5, %v2598_v4  ;;  %1186 = vmatpush.bf16.msra.mxu3 %v2871_v6  ;;  %314 = vadd.xlane.f32.xlu1 %v313_v12 }
  0x28   : > { %v3037_v14 = vld [vmem:[#allocation2 + $0x38c] sm:$0xf0]  ;;  %v2454_v17 = vld [vmem:[#allocation2 + $0x60] sm:$0xf]  ;;  %v2727_v18 = vor.u32 %v3005_v11, %v2726_v7  ;;  %1145 = vmatpush.bf16.msra.mxu0 %v2471_v15  ;;  %v2951_v11 = vld [vmem:[#allocation2 + $0xe4] sm:$0xf] }
  0x29   : > { %v2937_v19 = vld [vmem:[#allocation2 + $0x6c] sm:$0xf0]  ;;  %v2582_v20 = vld [vmem:[#allocation2 + $0x160] sm:$0xf]  ;;  %v2855_v23 = vor.u32 %v3037_v14, %v2854_v13  ;;  %1159 = vmatpush.bf16.msra.mxu1 %v2599_v16  ;;  %v2520_v13 = vld [vmem:[#allocation2 + $0xf0] sm:$0xf0] }
  0x2a   : > { %v2969_v22 = vld [vmem:[#allocation2 + $0x16c] sm:$0xf0]  ;;  %v2710_v24 = vld [vmem:[#allocation2 + $0x260] sm:$0xf]  ;;  %v2455_v28 = vor.u32 %v2937_v19, %v2454_v17  ;;  %1173 = vmatpush.bf16.msra.mxu2 %v2727_v18  ;;  %v2983_v14 = vld [vmem:[#allocation2 + $0x1e4] sm:$0xf]  ;;  %v2523_v16 = vor.u32 %v2951_v11, %v2520_v13 }
  0x2b   : > { %v3001_v25 = vld [vmem:[#allocation2 + $0x26c] sm:$0xf0]  ;;  %v2838_v26 = vld [vmem:[#allocation2 + $0x360] sm:$0xf]  ;;  %v2583_v29 = vor.u32 %v2969_v22, %v2582_v20  ;;  %1187 = vmatpush.bf16.msra.mxu3 %v2855_v23  ;;  %v2648_v15 = vld [vmem:[#allocation2 + $0x1f0] sm:$0xf0]  ;;  %v3416_v22 = vpop.eup %3117 }
  0x2c   : > { %v3033_v27 = vld [vmem:[#allocation2 + $0x36c] sm:$0xf0]  ;;  %v2711_v30 = vor.u32 %v3001_v25, %v2710_v24  ;;  %1146 = vmatpush.bf16.msra.mxu0 %v2455_v28  ;;  %v2438_v32 = vld [vmem:[#allocation2 + $0x40] sm:$0xf]  ;;  %v2651_v17 = vor.u32 %v2983_v14, %v2648_v15  ;;  %v3015_v18 = vld [vmem:[#allocation2 + $0x2e4] sm:$0xf]  ;;  %vm294_vm0 = vweird.f32 %v3416_v22 }
  0x2d   : > { %v2839_v31 = vor.u32 %v3033_v27, %v2838_v26  ;;  %1160 = vmatpush.bf16.msra.mxu1 %v2583_v29  ;;  %v2933_v33 = vld [vmem:[#allocation2 + $0x4c] sm:$0xf0]  ;;  %v2566_v34 = vld [vmem:[#allocation2 + $0x140] sm:$0xf]  ;;  %v2776_v19 = vld [vmem:[#allocation2 + $0x2f0] sm:$0xf0] }
  0x2e   : > { %1174 = vmatpush.bf16.msra.mxu2 %v2711_v30  ;;  %v2439_v35 = vor.u32 %v2933_v33, %v2438_v32  ;;  %v2965_v36 = vld [vmem:[#allocation2 + $0x14c] sm:$0xf0]  ;;  %v2694_v37 = vld [vmem:[#allocation2 + $0x240] sm:$0xf]  ;;  %v3047_v20 = vld [vmem:[#allocation2 + $0x3e4] sm:$0xf]  ;;  %v2779_v23 = vor.u32 %v3015_v18, %v2776_v19 }
  0x2f   : > { %1188 = vmatpush.bf16.msra.mxu3 %v2839_v31  ;;  %v2997_v38 = vld [vmem:[#allocation2 + $0x24c] sm:$0xf0]  ;;  %v2567_v39 = vor.u32 %v2965_v36, %v2566_v34  ;;  %v2822_v41 = vld [vmem:[#allocation2 + $0x340] sm:$0xf]  ;;  %v2904_v24 = vld [vmem:[#allocation2 + $0x3f0] sm:$0xf0] }
  0x30   : > { %v2695_v40 = vor.u32 %v2997_v38, %v2694_v37  ;;  %v3029_v42 = vld [vmem:[#allocation2 + $0x34c] sm:$0xf0]  ;;  %1147 = vmatpush.bf16.msra.mxu0 %v2439_v35  ;;  %v2422_v44 = vld [vmem:[#allocation2 + $0x20] sm:$0xf]  ;;  %v2947_v25 = vld [vmem:[#allocation2 + $0xc4] sm:$0xf]  ;;  %v2907_v27 = vor.u32 %v3047_v20, %v2904_v24 }
  0x31   : > { %v2823_v43 = vor.u32 %v3029_v42, %v2822_v41  ;;  %1161 = vmatpush.bf16.msra.mxu1 %v2567_v39  ;;  %v2929_v45 = vld [vmem:[#allocation2 + $0x2c] sm:$0xf0]  ;;  %v2550_v46 = vld [vmem:[#allocation2 + $0x120] sm:$0xf]  ;;  %v2504_v26 = vld [vmem:[#allocation2 + $0xd0] sm:$0xf0] }
  0x32   : > { %1175 = vmatpush.bf16.msra.mxu2 %v2695_v40  ;;  %v2423_v47 = vor.u32 %v2929_v45, %v2422_v44  ;;  %v2961_v48 = vld [vmem:[#allocation2 + $0x12c] sm:$0xf0]  ;;  %v2678_v49 = vld [vmem:[#allocation2 + $0x220] sm:$0xf]  ;;  %v2507_v28 = vor.u32 %v2947_v25, %v2504_v26  ;;  %v2979_v29 = vld [vmem:[#allocation2 + $0x1c4] sm:$0xf] }
  0x33   : > { %1189 = vmatpush.bf16.msra.mxu3 %v2823_v43  ;;  %v2993_v50 = vld [vmem:[#allocation2 + $0x22c] sm:$0xf0]  ;;  %v2551_v51 = vor.u32 %v2961_v48, %v2550_v46  ;;  %v2806_v53 = vld [vmem:[#allocation2 + $0x320] sm:$0xf]  ;;  %v2632_v30 = vld [vmem:[#allocation2 + $0x1d0] sm:$0xf0] }
  0x34   : > { %v2679_v52 = vor.u32 %v2993_v50, %v2678_v49  ;;  %v3025_v54 = vld [vmem:[#allocation2 + $0x32c] sm:$0xf0]  ;;  %1148 = vmatpush.bf16.msra.mxu0 %v2423_v47  ;;  %v2406_v57 = vld [vmem:[#allocation2] sm:$0xf]  ;;  %v3011_v31 = vld [vmem:[#allocation2 + $0x2c4] sm:$0xf]  ;;  %v2635_v32 = vor.u32 %v2979_v29, %v2632_v30 }
  0x35   : > { %v2807_v56 = vor.u32 %v3025_v54, %v2806_v53  ;;  %1162 = vmatpush.bf16.msra.mxu1 %v2551_v51  ;;  %v2925_v58 = vld [vmem:[#allocation2 + $0xc] sm:$0xf0]  ;;  %v2534_v59 = vld [vmem:[#allocation2 + $0x100] sm:$0xf]  ;;  %v2760_v33 = vld [vmem:[#allocation2 + $0x2d0] sm:$0xf0] }
  0x36   : > { %1176 = vmatpush.bf16.msra.mxu2 %v2679_v52  ;;  %v2407_v60 = vor.u32 %v2925_v58, %v2406_v57  ;;  %v2957_v61 = vld [vmem:[#allocation2 + $0x10c] sm:$0xf0]  ;;  %v2662_v62 = vld [vmem:[#allocation2 + $0x200] sm:$0xf]  ;;  %v3043_v34 = vld [vmem:[#allocation2 + $0x3c4] sm:$0xf]  ;;  %v2763_v37 = vor.u32 %v3011_v31, %v2760_v33 }
  0x37   : > { %1190 = vmatpush.bf16.msra.mxu3 %v2807_v56  ;;  %v2989_v63 = vld [vmem:[#allocation2 + $0x20c] sm:$0xf0]  ;;  %v2535_v4 = vor.u32 %v2957_v61, %v2534_v59  ;;  %v2790_v6 = vld [vmem:[#allocation2 + $0x300] sm:$0xf]  ;;  %v2888_v35 = vld [vmem:[#allocation2 + $0x3d0] sm:$0xf0] }
  0x38   : > { %v2663_v5 = vor.u32 %v2989_v63, %v2662_v62  ;;  %v3021_v7 = vld [vmem:[#allocation2 + $0x30c] sm:$0xf0]  ;;  %1149 = vmatpush.bf16.msra.mxu0 %v2407_v60  ;;  %v290_v36 = vmul.f32 512.0, %v3416_v22  ;;  %v2891_v38 = vor.u32 %v3043_v34, %v2888_v35  ;;  %v2943_v39 = vld [vmem:[#allocation2 + $0xa4] sm:$0xf] }
  0x39   : > { %v2791_v12 = vor.u32 %v3021_v7, %v2790_v6  ;;  %1163 = vmatpush.bf16.msra.mxu1 %v2535_v4  ;;  %v2488_v40 = vld [vmem:[#allocation2 + $0xb0] sm:$0xf0]  ;;  %v2975_v41 = vld [vmem:[#allocation2 + $0x1a4] sm:$0xf] }
  0x3a   : > { %1177 = vmatpush.bf16.msra.mxu2 %v2663_v5  ;;  %v2491_v42 = vor.u32 %v2943_v39, %v2488_v40  ;;  %v2616_v43 = vld [vmem:[#allocation2 + $0x1b0] sm:$0xf0]  ;;  %v3007_v44 = vld [vmem:[#allocation2 + $0x2a4] sm:$0xf]  ;;  %v291_v50 = vsub.f32 1.0, %v290_v36 }
  0x3b   : > { %1191 = vmatpush.bf16.msra.mxu3 %v2791_v12  ;;  %v2744_v45 = vld [vmem:[#allocation2 + $0x2b0] sm:$0xf0]  ;;  %v2619_v46 = vor.u32 %v2975_v41, %v2616_v43  ;;  %v3039_v48 = vld [vmem:[#allocation2 + $0x3a4] sm:$0xf] }
  0x3c   : > { %1198 = vmatpush.bf16.msrb.mxu0 %v2523_v16  ;;  %v2747_v47 = vor.u32 %v3007_v44, %v2744_v45  ;;  %v2872_v49 = vld [vmem:[#allocation2 + $0x3b0] sm:$0xf0]  ;;  %v2939_v52 = vld [vmem:[#allocation2 + $0x84] sm:$0xf]  ;;  %v292_v63 = vmul.f32 %v3416_v22, %v291_v50 }
  0x3d   : > { %1212 = vmatpush.bf16.msrb.mxu1 %v2651_v17  ;;  %v2875_v51 = vor.u32 %v3039_v48, %v2872_v49  ;;  %v2472_v53 = vld [vmem:[#allocation2 + $0x90] sm:$0xf0]  ;;  %v2971_v54 = vld [vmem:[#allocation2 + $0x184] sm:$0xf] }
  0x3e   : > { %1226 = vmatpush.bf16.msrb.mxu2 %v2779_v23  ;;  %v2475_v55 = vor.u32 %v2939_v52, %v2472_v53  ;;  %v2600_v56 = vld [vmem:[#allocation2 + $0x190] sm:$0xf0]  ;;  %v3003_v57 = vld [vmem:[#allocation2 + $0x284] sm:$0xf]  ;;  %v293_v19 = vadd.f32 %v3416_v22, %v292_v63 }
  0x3f   : > { %1240 = vmatpush.bf16.msrb.mxu3 %v2907_v27  ;;  %v2728_v58 = vld [vmem:[#allocation2 + $0x290] sm:$0xf0]  ;;  %v2603_v59 = vor.u32 %v2971_v54, %v2600_v56  ;;  %v3035_v61 = vld [vmem:[#allocation2 + $0x384] sm:$0xf] }
  0x40   : > { %1199 = vmatpush.bf16.msrb.mxu0 %v2507_v28  ;;  %v2731_v60 = vor.u32 %v3003_v57, %v2728_v58  ;;  %v2856_v62 = vld [vmem:[#allocation2 + $0x390] sm:$0xf0]  ;;  %v2935_v5 = vld [vmem:[#allocation2 + $0x64] sm:$0xf]  ;;  %v3423_v34 = vsel %vm294_vm0, %v3416_v22, %v293_v19  ;;  %vm1948_vm0 = vcmask 1045509  }
  0x41   : > { %1213 = vmatpush.bf16.msrb.mxu1 %v2635_v32  ;;  %v2859_v4 = vor.u32 %v3035_v61, %v2856_v62  ;;  %v2456_v6 = vld [vmem:[#allocation2 + $0x70] sm:$0xf0]  ;;  %v2967_v7 = vld [vmem:[#allocation2 + $0x164] sm:$0xf] }
  0x42   : > { %1227 = vmatpush.bf16.msrb.mxu2 %v2763_v37  ;;  %v2459_v11 = vor.u32 %v2935_v5, %v2456_v6  ;;  %v2584_v12 = vld [vmem:[#allocation2 + $0x170] sm:$0xf0]  ;;  %v2999_v13 = vld [vmem:[#allocation2 + $0x264] sm:$0xf] }
  0x43   : > { %1241 = vmatpush.bf16.msrb.mxu3 %v2891_v38  ;;  %v2712_v14 = vld [vmem:[#allocation2 + $0x270] sm:$0xf0]  ;;  %v2587_v15 = vor.u32 %v2967_v7, %v2584_v12  ;;  %v3031_v17 = vld [vmem:[#allocation2 + $0x364] sm:$0xf] }
  0x44   : > { %1200 = vmatpush.bf16.msrb.mxu0 %v2491_v42  ;;  %v2715_v16 = vor.u32 %v2999_v13, %v2712_v14  ;;  %v2840_v18 = vld [vmem:[#allocation2 + $0x370] sm:$0xf0]  ;;  %v2931_v23 = vld [vmem:[#allocation2 + $0x44] sm:$0xf] }
  0x45   : > { %1214 = vmatpush.bf16.msrb.mxu1 %v2619_v46  ;;  %v2843_v20 = vor.u32 %v3031_v17, %v2840_v18  ;;  %v2440_v24 = vld [vmem:[#allocation2 + $0x50] sm:$0xf0]  ;;  %v2963_v25 = vld [vmem:[#allocation2 + $0x144] sm:$0xf] }
  0x46   : > { %1228 = vmatpush.bf16.msrb.mxu2 %v2747_v47  ;;  %v2443_v26 = vor.u32 %v2931_v23, %v2440_v24  ;;  %v2568_v27 = vld [vmem:[#allocation2 + $0x150] sm:$0xf0]  ;;  %v2995_v28 = vld [vmem:[#allocation2 + $0x244] sm:$0xf] }
  0x47   : > { %1242 = vmatpush.bf16.msrb.mxu3 %v2875_v51  ;;  %v2696_v29 = vld [vmem:[#allocation2 + $0x250] sm:$0xf0]  ;;  %v2571_v30 = vor.u32 %v2963_v25, %v2568_v27  ;;  %v3027_v32 = vld [vmem:[#allocation2 + $0x344] sm:$0xf] }
  0x48   : > { %1201 = vmatpush.bf16.msrb.mxu0 %v2475_v55  ;;  %v2699_v31 = vor.u32 %v2995_v28, %v2696_v29  ;;  %v2824_v33 = vld [vmem:[#allocation2 + $0x350] sm:$0xf0]  ;;  %v2927_v36 = vld [vmem:[#allocation2 + $0x24] sm:$0xf] }
  0x49   : > { %1215 = vmatpush.bf16.msrb.mxu1 %v2603_v59  ;;  %v2827_v35 = vor.u32 %v3027_v32, %v2824_v33  ;;  %v2424_v37 = vld [vmem:[#allocation2 + $0x30] sm:$0xf0]  ;;  %v2959_v38 = vld [vmem:[#allocation2 + $0x124] sm:$0xf] }
  0x4a   : > { %1229 = vmatpush.bf16.msrb.mxu2 %v2731_v60  ;;  %v2427_v40 = vor.u32 %v2927_v36, %v2424_v37  ;;  %v2552_v41 = vld [vmem:[#allocation2 + $0x130] sm:$0xf0]  ;;  %v2991_v42 = vld [vmem:[#allocation2 + $0x224] sm:$0xf]  ;;  %v2526_v37 = vld [vmem:[#allocation2 + $0xe8] sm:$0xf] }
  0x4b   : > { %1243 = vmatpush.bf16.msrb.mxu3 %v2859_v4  ;;  %v2680_v43 = vld [vmem:[#allocation2 + $0x230] sm:$0xf0]  ;;  %v2555_v45 = vor.u32 %v2959_v38, %v2552_v41  ;;  %v3023_v22 = vld [vmem:[#allocation2 + $0x324] sm:$0xf]  ;;  %v2954_v38 = vld [vmem:[#allocation2 + $0xf4] sm:$0xf0] }
  0x4c   : > { %1202 = vmatpush.bf16.msrb.mxu0 %v2459_v11  ;;  %v2683_v46 = vor.u32 %v2991_v42, %v2680_v43  ;;  %v2808_v47 = vld [vmem:[#allocation2 + $0x330] sm:$0xf0]  ;;  %v2923_v50 = vld [vmem:[#allocation2 + $0x4] sm:$0xf]  ;;  %v2654_v41 = vld [vmem:[#allocation2 + $0x1e8] sm:$0xf] }
  0x4d   : > { %1216 = vmatpush.bf16.msrb.mxu1 %v2587_v15  ;;  %v2811_v49 = vor.u32 %v3023_v22, %v2808_v47  ;;  %v2408_v51 = vld [vmem:[#allocation2 + $0x10] sm:$0xf0]  ;;  %v2955_v52 = vld [vmem:[#allocation2 + $0x104] sm:$0xf]  ;;  %v2986_v42 = vld [vmem:[#allocation2 + $0x1f4] sm:$0xf0] }
  0x4e   : > { %1230 = vmatpush.bf16.msrb.mxu2 %v2715_v16  ;;  %v2536_v55 = vld [vmem:[#allocation2 + $0x110] sm:$0xf0]  ;;  %v2987_v56 = vld [vmem:[#allocation2 + $0x204] sm:$0xf]  ;;  %v2411_v58 = vor.u32 %v2923_v50, %v2408_v51  ;;  %v3050_v50 = vld [vmem:[#allocation2 + $0x3f4] sm:$0xf0]  ;;  %v2527_v51 = vor.u32 %v2954_v38, %v2526_v37 }
  0x4f   : > { %1244 = vmatpush.bf16.msrb.mxu3 %v2843_v20  ;;  %v2664_v57 = vld [vmem:[#allocation2 + $0x210] sm:$0xf0]  ;;  %v2539_v59 = vor.u32 %v2955_v52, %v2536_v55  ;;  %v3019_v60 = vld [vmem:[#allocation2 + $0x304] sm:$0xf]  ;;  %v2950_v55 = vld [vmem:[#allocation2 + $0xd4] sm:$0xf0] }
  0x50   : > { %1203 = vmatpush.bf16.msrb.mxu0 %v2443_v26  ;;  %v2792_v61 = vld [vmem:[#allocation2 + $0x310] sm:$0xf0]  ;;  %v2667_v63 = vor.u32 %v2987_v56, %v2664_v57  ;;  %v2938_v37 = vld [vmem:[#allocation2 + $0x74] sm:$0xf0] }
  0x51   : > { %1217 = vmatpush.bf16.msrb.mxu1 %v2571_v30  ;;  %v2795_v4 = vor.u32 %v3019_v60, %v2792_v61  ;;  %v2766_v60 = vld [vmem:[#allocation2 + $0x2c8] sm:$0xf]  ;;  %v3014_v61 = vld [vmem:[#allocation2 + $0x2d4] sm:$0xf0] }
  0x52   : > { %1231 = vmatpush.bf16.msrb.mxu2 %v2699_v31 }
  0x53   : > { %1245 = vmatpush.bf16.msrb.mxu3 %v2827_v35 }
  0x54   : > { %1204 = vmatpush.bf16.msrb.mxu0 %v2427_v40 }
  0x55   : > { %1218 = vmatpush.bf16.msrb.mxu1 %v2555_v45 }
  0x56   : > { %1232 = vmatpush.bf16.msrb.mxu2 %v2683_v46 }
  0x57   : > { %1246 = vmatpush.bf16.msrb.mxu3 %v2811_v49  ;;  %v2910_v49 = vld [vmem:[#allocation2 + $0x3e8] sm:$0xf] }
  0x58   : > { %1205 = vmatpush.bf16.msrb.mxu0 %v2411_v58  ;;  %v2911_v57 = vor.u32 %v3050_v50, %v2910_v49  ;;  %v2638_v58 = vld [vmem:[#allocation2 + $0x1c8] sm:$0xf]  ;;  %v2998_v49 = vld [vmem:[#allocation2 + $0x254] sm:$0xf0] }
  0x59   : > { %1219 = vmatpush.bf16.msrb.mxu1 %v2539_v59  ;;  %v2982_v59 = vld [vmem:[#allocation2 + $0x1d4] sm:$0xf0]  ;;  %v2830_v50 = vld [vmem:[#allocation2 + $0x348] sm:$0xf] }
  0x5a   : > { %1233 = vmatpush.bf16.msrb.mxu2 %v2667_v63  ;;  %v3046_v63 = vld [vmem:[#allocation2 + $0x3d4] sm:$0xf0] }
  0x5b   : > { %1247 = vmatpush.bf16.msrb.mxu3 %v2795_v4 }
  0x90   : > { %v283_v39 = vpop.xlane.xlu0 %282 }
  0x91   : > { %v3426_v44 = vmul.f32 %v3423_v34, %v283_v39 }
  0x92   : > { %v310_v48 = vpop.xlane.xlu1 %309 }
  0x93   : > { %v316_v53 = vmul.f32 %v310_v48, %v3423_v34  ;;  %v326_v54 = vmul.f32 %v3426_v44, %v3426_v44  ;;  %v318_v30 = vsub.f32 %v3355_v0, %v3426_v44  ;;  %v319_v31 = vsub.f32 %v3360_v1, %v3426_v44  ;;  %v3018_v48 = vld [vmem:[#allocation2 + $0x2f4] sm:$0xf0] }
  0x94   : > { %v320_v32 = vsub.f32 %v3365_v2, %v3426_v44  ;;  %v321_v36 = vsub.f32 %v3370_v3, %v3426_v44 }
  0x95   : > { %v328_v62 = vsub.f32 %v316_v53, %v326_v54  ;;  %v2510_v54 = vld [vmem:[#allocation2 + $0xc8] sm:$0xf] }
  0x96   : > { %v2511_v4 = vor.u32 %v2950_v55, %v2510_v54  ;;  %v2430_v55 = vld [vmem:[#allocation2 + $0x28] sm:$0xf] }
  0x97   : > { %v330_v5 = vadd.f32 1e-05, %v328_v62  ;;  %v2894_v62 = vld [vmem:[#allocation2 + $0x3c8] sm:$0xf] }
  0x98   : > { %v288_v6 = vpop.xlane.xlu0 %287 }
  0x99   : > { %3119 = vrsqrt.f32 %v330_v5  ;;  %v297_v7 = vmul.f32 %v3423_v34, %v288_v6  ;;  %vm338_vm2 = vweird.f32 %v330_v5  ;;  %v2494_v6 = vld [vmem:[#allocation2 + $0xa8] sm:$0xf] }
  0x9a   : > { %v315_v11 = vpop.xlane.xlu1 %314 }
  0x9b   : > { %v317_v12 = vmul.f32 %v315_v11, %v3423_v34  ;;  %v327_v13 = vmul.f32 %v297_v7, %v297_v7  ;;  %v322_v35 = vsub.f32 %v3383_v8, %v297_v7  ;;  %v323_v40 = vsub.f32 %v3388_v9, %v297_v7  ;;  %v2782_v8 = vld [vmem:[#allocation2 + $0x2e8] sm:$0xf] }
  0x9c   : > { %v324_v0 = vsub.f32 %v3393_v10, %v297_v7  ;;  %v325_v1 = vsub.f32 %v3407_v21, %v297_v7  ;;  %v2655_v9 = vor.u32 %v2986_v42, %v2654_v41  ;;  %v2783_v56 = vor.u32 %v3018_v48, %v2782_v8  ;;  %v2946_v7 = vld [vmem:[#allocation2 + $0xb4] sm:$0xf0]  ;;  %v2846_v42 = vld [vmem:[#allocation2 + $0x368] sm:$0xf] }
  0x9d   : > { %v329_v14 = vsub.f32 %v317_v12, %v327_v13  ;;  %v2767_v11 = vor.u32 %v3014_v61, %v2766_v60  ;;  %v2895_v12 = vor.u32 %v3046_v63, %v2894_v62  ;;  %v2622_v13 = vld [vmem:[#allocation2 + $0x1a8] sm:$0xf]  ;;  %v3002_v41 = vld [vmem:[#allocation2 + $0x274] sm:$0xf0] }
  0x9e   : > { %v2934_v8 = vld [vmem:[#allocation2 + $0x54] sm:$0xf0]  ;;  %v2702_v48 = vld [vmem:[#allocation2 + $0x248] sm:$0xf] }
  0x9f   : > { %v3120_v15 = vpop.eup %3119  ;;  %v331_v16 = vadd.f32 1e-05, %v329_v14  ;;  %v2978_v14 = vld [vmem:[#allocation2 + $0x1b4] sm:$0xf0]  ;;  %v2686_v61 = vld [vmem:[#allocation2 + $0x228] sm:$0xf] }
  0xa0   : > { %v333_v17 = vmul.f32 %v3120_v15, %v330_v5  ;;  %vm339_vm1 = vweird.f32 %v3120_v15  ;;  %v2639_v5 = vor.u32 %v2982_v59, %v2638_v58  ;;  %v2558_v59 = vld [vmem:[#allocation2 + $0x128] sm:$0xf]  ;;  %v2962_v60 = vld [vmem:[#allocation2 + $0x134] sm:$0xf0] }
  0xa1   : > { %3121 = vrsqrt.f32 %v331_v16  ;;  %vm340_vm3 = vmor %vm338_vm2, %vm339_vm1  ;;  %vm348_vm5 = vweird.f32 %v331_v16  ;;  %v2994_v62 = vld [vmem:[#allocation2 + $0x234] sm:$0xf0]  ;;  %v2814_v63 = vld [vmem:[#allocation2 + $0x328] sm:$0xf]  ;;  %vm1944_vm1 = vcmask 1043458   ;;  %vm1950_vm2 = vcmask 1044483  }
  0xa2   : > { %v334_v18 = vmul.f32 %v3120_v15, %v333_v17  ;;  %v2878_v17 = vld [vmem:[#allocation2 + $0x3a8] sm:$0xf] }
  0xa4   : > { %v335_v19 = vmul.f32 0.5, %v334_v18  ;;  %v3042_v18 = vld [vmem:[#allocation2 + $0x3b4] sm:$0xf0] }
  0xa6   : > { %v336_v20 = vsub.f32 1.5, %v335_v19  ;;  %v2495_v19 = vor.u32 %v2946_v7, %v2494_v6  ;;  %v2559_v7 = vor.u32 %v2962_v60, %v2558_v59  ;;  %v2972_v60 = vld [vmem:[#allocation2 + $0x18c] sm:$0xf] }
  0xa7   : > { %v3122_v23 = vpop.eup %3121 }
  0xa8   : > { %v343_v24 = vmul.f32 %v3122_v23, %v331_v16  ;;  %v337_v25 = vmul.f32 %v3120_v15, %v336_v20  ;;  %vm349_vm4 = vweird.f32 %v3122_v23  ;;  %v3010_v16 = vld [vmem:[#allocation2 + $0x2b4] sm:$0xf0]  ;;  %v2623_v20 = vor.u32 %v2978_v14, %v2622_v13 }
  0xa9   : > { %vm350_vm6 = vmor %vm348_vm5, %vm349_vm4  ;;  %v2958_v13 = vld [vmem:[#allocation2 + $0x114] sm:$0xf0]  ;;  %v2687_v14 = vor.u32 %v2994_v62, %v2686_v61  ;;  %v2608_v61 = vld [vmem:[#allocation2 + $0x198] sm:$0xf0]  ;;  %vm1962_vm4 = vcmask 1046533   ;;  %vm1956_vm5 = vcmask 1045508  }
  0xaa   : > { %v344_v26 = vmul.f32 %v3122_v23, %v343_v24  ;;  %v341_v28 = vsel %vm340_vm3, %v3120_v15, %v337_v25  ;;  %v2750_v15 = vld [vmem:[#allocation2 + $0x2a8] sm:$0xf]  ;;  %v2942_v24 = vld [vmem:[#allocation2 + $0x94] sm:$0xf0]  ;;  %v3004_v62 = vld [vmem:[#allocation2 + $0x28c] sm:$0xf] }
  0xab   : > { %v352_v39 = vmul.f32 %v341_v28, %v318_v30  ;;  %v353_v43 = vmul.f32 %v341_v28, %v319_v31  ;;  %v354_v45 = vmul.f32 %v341_v28, %v320_v32  ;;  %v355_v46 = vmul.f32 %v341_v28, %v321_v36  ;;  %v2974_v28 = vld [vmem:[#allocation2 + $0x194] sm:$0xf0]  ;;  %v2862_v31 = vld [vmem:[#allocation2 + $0x388] sm:$0xf] }
  0xac   : > { %v345_v27 = vmul.f32 0.5, %v344_v26  ;;  %v2751_v25 = vor.u32 %v3010_v16, %v2750_v15  ;;  %v2879_v26 = vor.u32 %v3042_v18, %v2878_v17  ;;  %v3006_v30 = vld [vmem:[#allocation2 + $0x294] sm:$0xf0]  ;;  %v2462_v36 = vld [vmem:[#allocation2 + $0x68] sm:$0xf]  ;;  %vm1954_vm3 = vcmask 1046534  }
  0xad   : > { %v3038_v32 = vld [vmem:[#allocation2 + $0x394] sm:$0xf0]  ;;  %v2670_v16 = vld [vmem:[#allocation2 + $0x208] sm:$0xf] }
  0xae   : > { %v346_v29 = vsub.f32 1.5, %v345_v27  ;;  %v2606_v27 = vld [vmem:[#allocation2 + $0x188] sm:$0xf]  ;;  %v2990_v17 = vld [vmem:[#allocation2 + $0x214] sm:$0xf0] }
  0xaf   : > { %v2798_v18 = vld [vmem:[#allocation2 + $0x308] sm:$0xf] }
  0xb0   : > { %v347_v33 = vmul.f32 %v3122_v23, %v346_v29  ;;  %v2734_v29 = vld [vmem:[#allocation2 + $0x288] sm:$0xf] }
  0xb1   : > { %v2735_v38 = vor.u32 %v3006_v30, %v2734_v29  ;;  %v2784_v29 = vld [vmem:[#allocation2 + $0x2f8] sm:$0xf0]  ;;  %v3048_v30 = vld [vmem:[#allocation2 + $0x3ec] sm:$0xf] }
  0xb2   : > { %v351_v2 = vsel %vm350_vm6, %v3122_v23, %v347_v33  ;;  %v2478_v23 = vld [vmem:[#allocation2 + $0x88] sm:$0xf]  ;;  %vm1967_vm6 = vcmask 1045504  }
  0xb3   : > { %v356_v22 = vmul.f32 %v351_v2, %v322_v35  ;;  %v357_v47 = vmul.f32 %v351_v2, %v323_v40  ;;  %v358_v3 = vmul.f32 %v351_v2, %v324_v0  ;;  %v359_v44 = vmul.f32 %v351_v2, %v325_v1  ;;  %v2590_v40 = vld [vmem:[#allocation2 + $0x168] sm:$0xf]  ;;  %v2970_v0 = vld [vmem:[#allocation2 + $0x174] sm:$0xf0] }
  0xb4   : > { %v2479_v33 = vor.u32 %v2942_v24, %v2478_v23  ;;  %v2607_v35 = vor.u32 %v2974_v28, %v2606_v27  ;;  %v2718_v1 = vld [vmem:[#allocation2 + $0x268] sm:$0xf]  ;;  %v3034_v2 = vld [vmem:[#allocation2 + $0x374] sm:$0xf0]  ;;  %v2528_v23 = vld [vmem:[#allocation2 + $0xf8] sm:$0xf0] }
  0xb5   : > { %v3445_v52 = vpack.c.bf16 %v356_v22, %v352_v39  ;;  %v3447_v10 = vpack.c.bf16 %v357_v47, %v353_v43  ;;  %v3449_v21 = vpack.c.bf16 %v358_v3, %v354_v45  ;;  %v3451_v53 = vpack.c.bf16 %v359_v44, %v355_v46  ;;  %v2446_v46 = vld [vmem:[#allocation2 + $0x48] sm:$0xf]  ;;  %v2966_v44 = vld [vmem:[#allocation2 + $0x154] sm:$0xf0]  ;;  %v2984_v24 = vld [vmem:[#allocation2 + $0x1ec] sm:$0xf] }
  0xb6   : > { %v2863_v39 = vor.u32 %v3038_v32, %v2862_v31  ;;  %v2463_v43 = vor.u32 %v2938_v37, %v2462_v36  ;;  %v2591_v45 = vor.u32 %v2970_v0, %v2590_v40  ;;  %v2719_v22 = vor.u32 %v3002_v41, %v2718_v1  ;;  %v2574_v3 = vld [vmem:[#allocation2 + $0x148] sm:$0xf]  ;;  %v2912_v31 = vld [vmem:[#allocation2 + $0x3f8] sm:$0xf0]  ;;  %v2948_v37 = vld [vmem:[#allocation2 + $0xcc] sm:$0xf] }
  0xb7   : > { %1150 = vmatmul.bf16.vlgmr.msra.gmra.mxu0 %v3445_v52  ;;  %1164 = vmatmul.bf16.vlgmr.msra.gmra.mxu1 %v3447_v10  ;;  %v2847_v47 = vor.u32 %v3034_v2, %v2846_v42  ;;  %v2575_v54 = vor.u32 %v2966_v44, %v2574_v3  ;;  %v2671_v32 = vor.u32 %v2990_v17, %v2670_v16  ;;  %v2980_v0 = vld [vmem:[#allocation2 + $0x1cc] sm:$0xf]  ;;  %v2640_v1 = vld [vmem:[#allocation2 + $0x1d8] sm:$0xf0] }
  0xb8   : > { %1178 = vmatmul.bf16.vlgmr.msra.gmra.mxu2 %v3449_v21  ;;  %1192 = vmatmul.bf16.vlgmr.msra.gmra.mxu3 %v3451_v53  ;;  %v2915_v40 = vor.u32 %v3048_v30, %v2912_v31  ;;  %v3012_v41 = vld [vmem:[#allocation2 + $0x2cc] sm:$0xf]  ;;  %v2768_v42 = vld [vmem:[#allocation2 + $0x2d8] sm:$0xf0] }
  0xb9   : > { %1254 = vmatpush.bf16.msra.mxu0 %v2527_v51  ;;  %1268 = vmatpush.bf16.msra.mxu1 %v2655_v9  ;;  %v3030_v51 = vld [vmem:[#allocation2 + $0x354] sm:$0xf0]  ;;  %v2447_v9 = vor.u32 %v2934_v8, %v2446_v46  ;;  %v3044_v2 = vld [vmem:[#allocation2 + $0x3cc] sm:$0xf]  ;;  %v2643_v46 = vor.u32 %v2980_v0, %v2640_v1  ;;  %v2592_v16 = vld [vmem:[#allocation2 + $0x178] sm:$0xf0] }
  0xba   : > { %1282 = vmatpush.bf16.msra.mxu2 %v2783_v56  ;;  %1296 = vmatpush.bf16.msra.mxu3 %v2911_v57  ;;  %v2930_v56 = vld [vmem:[#allocation2 + $0x34] sm:$0xf0]  ;;  %v2703_v57 = vor.u32 %v2998_v49, %v2702_v48  ;;  %v2831_v58 = vor.u32 %v3030_v51, %v2830_v50  ;;  %v2944_v8 = vld [vmem:[#allocation2 + $0xac] sm:$0xf]  ;;  %v2624_v48 = vld [vmem:[#allocation2 + $0x1b8] sm:$0xf0] }
  0xbb   : > { %v2431_v6 = vor.u32 %v2930_v56, %v2430_v55  ;;  %v2976_v44 = vld [vmem:[#allocation2 + $0x1ac] sm:$0xf]  ;;  %v2752_v50 = vld [vmem:[#allocation2 + $0x2b8] sm:$0xf0] }
  0xbc   : > { %v3008_v49 = vld [vmem:[#allocation2 + $0x2ac] sm:$0xf]  ;;  %v2627_v55 = vor.u32 %v2976_v44, %v2624_v48  ;;  %v2576_v30 = vld [vmem:[#allocation2 + $0x158] sm:$0xf0] }
  0xbd   : > { %1255 = vmatpush.bf16.msra.mxu0 %v2511_v4  ;;  %1269 = vmatpush.bf16.msra.mxu1 %v2639_v5  ;;  %v3026_v4 = vld [vmem:[#allocation2 + $0x334] sm:$0xf0]  ;;  %v2414_v5 = vld [vmem:[#allocation2 + $0x8] sm:$0xf]  ;;  %v3040_v51 = vld [vmem:[#allocation2 + $0x3ac] sm:$0xf] }
  0xbe   : > { %1283 = vmatpush.bf16.msra.mxu2 %v2767_v11  ;;  %1297 = vmatpush.bf16.msra.mxu3 %v2895_v12  ;;  %v2926_v11 = vld [vmem:[#allocation2 + $0x14] sm:$0xf0]  ;;  %v2542_v12 = vld [vmem:[#allocation2 + $0x108] sm:$0xf]  ;;  %v2815_v15 = vor.u32 %v3026_v4, %v2814_v63  ;;  %v2940_v56 = vld [vmem:[#allocation2 + $0x8c] sm:$0xf] }
  0xbf   : > { %v2415_v27 = vor.u32 %v2926_v11, %v2414_v5  ;;  %v2543_v28 = vor.u32 %v2958_v13, %v2542_v12  ;;  %v2736_v63 = vld [vmem:[#allocation2 + $0x298] sm:$0xf0]  ;;  %v3036_v4 = vld [vmem:[#allocation2 + $0x38c] sm:$0xf] }
  0xc0   : > { %v2864_v5 = vld [vmem:[#allocation2 + $0x398] sm:$0xf0]  ;;  %v2936_v11 = vld [vmem:[#allocation2 + $0x6c] sm:$0xf]  ;;  %v2739_v13 = vor.u32 %v3004_v62, %v2736_v63 }
  0xc1   : > { %1256 = vmatpush.bf16.msra.mxu0 %v2495_v19  ;;  %1270 = vmatpush.bf16.msra.mxu1 %v2623_v20  ;;  %v3022_v19 = vld [vmem:[#allocation2 + $0x314] sm:$0xf0]  ;;  %v2952_v20 = vld [vmem:[#allocation2 + $0xec] sm:$0xf]  ;;  %v2464_v12 = vld [vmem:[#allocation2 + $0x78] sm:$0xf0] }
  0xc2   : > { %1284 = vmatpush.bf16.msra.mxu2 %v2751_v25  ;;  %1298 = vmatpush.bf16.msra.mxu3 %v2879_v26  ;;  %v2656_v25 = vld [vmem:[#allocation2 + $0x1f8] sm:$0xf0]  ;;  %v3016_v26 = vld [vmem:[#allocation2 + $0x2ec] sm:$0xf] }
  0xc3   : > { %v2659_v36 = vor.u32 %v2984_v24, %v2656_v25  ;;  %v3000_v17 = vld [vmem:[#allocation2 + $0x26c] sm:$0xf] }
  0xc4   : > { %v2932_v25 = vld [vmem:[#allocation2 + $0x4c] sm:$0xf] }
  0xc5   : > { %1257 = vmatpush.bf16.msra.mxu0 %v2479_v33  ;;  %1271 = vmatpush.bf16.msra.mxu1 %v2607_v35  ;;  %v2799_v33 = vor.u32 %v3022_v19, %v2798_v18  ;;  %v2531_v35 = vor.u32 %v2952_v20, %v2528_v23  ;;  %v2720_v18 = vld [vmem:[#allocation2 + $0x278] sm:$0xf0]  ;;  %v3032_v19 = vld [vmem:[#allocation2 + $0x36c] sm:$0xf]  ;;  %v2467_v23 = vor.u32 %v2936_v11, %v2464_v12 }
  0xc6   : > { %1285 = vmatpush.bf16.msra.mxu2 %v2735_v38  ;;  %1299 = vmatpush.bf16.msra.mxu3 %v2863_v39  ;;  %v2512_v38 = vld [vmem:[#allocation2 + $0xd8] sm:$0xf0]  ;;  %v2787_v39 = vor.u32 %v3016_v26, %v2784_v29  ;;  %v2964_v29 = vld [vmem:[#allocation2 + $0x14c] sm:$0xf] }
  0xc7   : > { %1206 = vmatmul.bf16.vlgmr.msrb.gmra.mxu0 %v3445_v52  ;;  %1220 = vmatmul.bf16.vlgmr.msrb.gmra.mxu1 %v3447_v10  ;;  %v2848_v20 = vld [vmem:[#allocation2 + $0x378] sm:$0xf0]  ;;  %v2996_v31 = vld [vmem:[#allocation2 + $0x24c] sm:$0xf] }
  0xc8   : > { %1234 = vmatmul.bf16.vlgmr.msrb.gmra.mxu2 %v3449_v21  ;;  %1248 = vmatmul.bf16.vlgmr.msrb.gmra.mxu3 %v3451_v53  ;;  %v2448_v26 = vld [vmem:[#allocation2 + $0x58] sm:$0xf0]  ;;  %v2960_v1 = vld [vmem:[#allocation2 + $0x12c] sm:$0xf] }
  0xc9   : > { %1258 = vmatpush.bf16.msra.mxu0 %v2463_v43  ;;  %1272 = vmatpush.bf16.msra.mxu1 %v2591_v45  ;;  %v2896_v43 = vld [vmem:[#allocation2 + $0x3d8] sm:$0xf0]  ;;  %v2515_v45 = vor.u32 %v2948_v37, %v2512_v38  ;;  %v2579_v37 = vor.u32 %v2964_v29, %v2576_v30  ;;  %v2928_v38 = vld [vmem:[#allocation2 + $0x2c] sm:$0xf] }
  0xca   : > { %1286 = vmatpush.bf16.msra.mxu2 %v2719_v22  ;;  %1300 = vmatpush.bf16.msra.mxu3 %v2847_v47  ;;  %v2496_v22 = vld [vmem:[#allocation2 + $0xb8] sm:$0xf0]  ;;  %v2771_v47 = vor.u32 %v3012_v41, %v2768_v42  ;;  %v2899_v3 = vor.u32 %v3044_v2, %v2896_v43  ;;  %v2992_v42 = vld [vmem:[#allocation2 + $0x22c] sm:$0xf] }
  0xcb   : > { %v2560_v41 = vld [vmem:[#allocation2 + $0x138] sm:$0xf0]  ;;  %v3024_v43 = vld [vmem:[#allocation2 + $0x32c] sm:$0xf] }
  0xcc   : > { %v2688_v2 = vld [vmem:[#allocation2 + $0x238] sm:$0xf0]  ;;  %v2956_v48 = vld [vmem:[#allocation2 + $0x10c] sm:$0xf] }
  0xcd   : > { %1259 = vmatpush.bf16.msra.mxu0 %v2447_v9  ;;  %1273 = vmatpush.bf16.msra.mxu1 %v2575_v54  ;;  %v2880_v9 = vld [vmem:[#allocation2 + $0x3b8] sm:$0xf0]  ;;  %v2499_v54 = vor.u32 %v2944_v8, %v2496_v22  ;;  %v2563_v8 = vor.u32 %v2960_v1, %v2560_v41  ;;  %v2924_v22 = vld [vmem:[#allocation2 + $0xc] sm:$0xf] }
  0xce   : > { %1287 = vmatpush.bf16.msra.mxu2 %v2703_v57  ;;  %1301 = vmatpush.bf16.msra.mxu3 %v2831_v58  ;;  %v2480_v57 = vld [vmem:[#allocation2 + $0x98] sm:$0xf0]  ;;  %v2755_v58 = vor.u32 %v3008_v49, %v2752_v50  ;;  %v2883_v59 = vor.u32 %v3040_v51, %v2880_v9  ;;  %v2988_v50 = vld [vmem:[#allocation2 + $0x20c] sm:$0xf] }
  0xcf   : > { %v2544_v49 = vld [vmem:[#allocation2 + $0x118] sm:$0xf0]  ;;  %v3020_v9 = vld [vmem:[#allocation2 + $0x30c] sm:$0xf] }
  0xd0   : > { %v2672_v51 = vld [vmem:[#allocation2 + $0x218] sm:$0xf0] }
  0xd1   : > { %1260 = vmatpush.bf16.msra.mxu0 %v2431_v6  ;;  %1274 = vmatpush.bf16.msra.mxu1 %v2559_v7  ;;  %v2483_v6 = vor.u32 %v2940_v56, %v2480_v57  ;;  %v2611_v7 = vor.u32 %v2972_v60, %v2608_v61  ;;  %v2547_v56 = vor.u32 %v2956_v48, %v2544_v49  ;;  %v3472_v61 = vld [vmem:[%s4674_s3] sm:$0xf] }
  0xd2   : > { %1288 = vmatpush.bf16.msra.mxu2 %v2687_v14  ;;  %1302 = vmatpush.bf16.msra.mxu3 %v2815_v15  ;;  %v2867_v14 = vor.u32 %v3036_v4, %v2864_v5  ;;  %v2968_v15 = vld [vmem:[#allocation2 + $0x16c] sm:$0xf]  ;;  %v2675_v57 = vor.u32 %v2988_v50, %v2672_v51  ;;  %v494_v62 = vperm.slane %v3472_v61, 0  ;;  %v496_v48 = vperm.slane %v3472_v61, 2 }
  0xd3   : > { %v2595_v24 = vor.u32 %v2968_v15, %v2592_v16 }
  0xd5   : > { %1261 = vmatpush.bf16.msra.mxu0 %v2415_v27  ;;  %1275 = vmatpush.bf16.msra.mxu1 %v2543_v28  ;;  %v2723_v27 = vor.u32 %v3000_v17, %v2720_v18  ;;  %v2851_v28 = vor.u32 %v3032_v19, %v2848_v20  ;;  %v495_v18 = vperm.slane %v3472_v61, 1 }
  0xd6   : > { %1289 = vmatpush.bf16.msra.mxu2 %v2671_v32  ;;  %1303 = vmatpush.bf16.msra.mxu3 %v2799_v33  ;;  %v2704_v32 = vld [vmem:[#allocation2 + $0x258] sm:$0xf0]  ;;  %v3028_v33 = vld [vmem:[#allocation2 + $0x34c] sm:$0xf] }
  0xd8   : > { %1262 = vmatmul.bf16.vlgmr.msra.gmra.mxu0 %v3445_v52  ;;  %1276 = vmatmul.bf16.vlgmr.msra.gmra.mxu1 %v3447_v10 }
  0xd9   : > { %1310 = vmatpush.bf16.msrb.mxu0 %v2531_v35  ;;  %1324 = vmatpush.bf16.msrb.mxu1 %v2659_v36  ;;  %v2832_v35 = vld [vmem:[#allocation2 + $0x358] sm:$0xf0]  ;;  %v2451_v36 = vor.u32 %v2932_v25, %v2448_v26 }
  0xda   : > { %1338 = vmatpush.bf16.msrb.mxu2 %v2787_v39  ;;  %1352 = vmatpush.bf16.msrb.mxu3 %v2915_v40  ;;  %v2432_v39 = vld [vmem:[#allocation2 + $0x38] sm:$0xf0]  ;;  %v2707_v40 = vor.u32 %v2996_v31, %v2704_v32  ;;  %v2835_v0 = vor.u32 %v3028_v33, %v2832_v35  ;;  %v3487_v31 = vld [vmem:[%s266_s29] sm:$0xff]  ;;  %v3489_v32 = vld [vmem:[%s266_s29 + $0x8] sm:$0xff] }
  0xdb   : > { %1290 = vmatmul.bf16.vlgmr.msra.gmra.mxu2 %v3449_v21  ;;  %1304 = vmatmul.bf16.vlgmr.msra.gmra.mxu3 %v3451_v53 }
  0xdd   : > { %1311 = vmatpush.bf16.msrb.mxu0 %v2515_v45  ;;  %1325 = vmatpush.bf16.msrb.mxu1 %v2643_v46  ;;  %v2816_v45 = vld [vmem:[#allocation2 + $0x338] sm:$0xf0]  ;;  %v2435_v46 = vor.u32 %v2928_v38, %v2432_v39  ;;  %v1434_v38 = vmul.f32 %v3489_v32, %v3489_v32 }
  0xde   : > { %1339 = vmatpush.bf16.msrb.mxu2 %v2771_v47  ;;  %1353 = vmatpush.bf16.msrb.mxu3 %v2899_v3  ;;  %v2416_v47 = vld [vmem:[#allocation2 + $0x18] sm:$0xf0]  ;;  %v2691_v3 = vor.u32 %v2992_v42, %v2688_v2  ;;  %v2819_v44 = vor.u32 %v3024_v43, %v2816_v45 }
  0xdf   : > { %v3506_v45 = vld [vmem:[%s266_s29 + $0x18] sm:$0xff] }
  0xe1   : > { %1312 = vmatpush.bf16.msrb.mxu0 %v2499_v54  ;;  %1326 = vmatpush.bf16.msrb.mxu1 %v2627_v55  ;;  %v2800_v54 = vld [vmem:[#allocation2 + $0x318] sm:$0xf0]  ;;  %v2419_v55 = vor.u32 %v2924_v22, %v2416_v47 }
  0xe2   : > { %1340 = vmatpush.bf16.msrb.mxu2 %v2755_v58  ;;  %1354 = vmatpush.bf16.msrb.mxu3 %v2883_v59  ;;  %v2803_v58 = vor.u32 %v3020_v9, %v2800_v54 }
  0xe5   : > { %1313 = vmatpush.bf16.msrb.mxu0 %v2483_v6  ;;  %1327 = vmatpush.bf16.msrb.mxu1 %v2611_v7 }
  0xe6   : > { %1341 = vmatpush.bf16.msrb.mxu2 %v2739_v13  ;;  %1355 = vmatpush.bf16.msrb.mxu3 %v2867_v14 }
  0xe9   : > { %1314 = vmatpush.bf16.msrb.mxu0 %v2467_v23  ;;  %1328 = vmatpush.bf16.msrb.mxu1 %v2595_v24 }
  0xea   : > { %1342 = vmatpush.bf16.msrb.mxu2 %v2723_v27  ;;  %1356 = vmatpush.bf16.msrb.mxu3 %v2851_v28 }
  0xed   : > { %1315 = vmatpush.bf16.msrb.mxu0 %v2451_v36  ;;  %1329 = vmatpush.bf16.msrb.mxu1 %v2579_v37  ;;  %v1427_v36 = vadd.f32 %v3489_v32, %v3487_v31  ;;  %v1433_v37 = vmul.f32 %v3487_v31, %v3487_v31 }
  0xee   : > { %1343 = vmatpush.bf16.msrb.mxu2 %v2707_v40  ;;  %1357 = vmatpush.bf16.msrb.mxu3 %v2835_v0  ;;  %v3497_v40 = vld [vmem:[%s266_s29 + $0x10] sm:$0xff]  ;;  %s3201_s29 = scalar_lea.hbm %s3200_s28, 512 }
  0xef   : > { %v1428_v0 = vadd.f32 %v1427_v36, %v3497_v40  ;;  %v1435_v1 = vmul.f32 %v3497_v40, %v3497_v40  ;;  %v1437_v41 = vadd.f32 %v1434_v38, %v1433_v37  ;;  %p3202_p0 = scmp.ne.s32.totalorder %s3200_s28, %s3201_s29  ;;  %p3207_p4 = scmp.lt.s32.totalorder %s3205_s11, %s3201_s29 }
  0xf1   : > { %1316 = vmatpush.bf16.msrb.mxu0 %v2435_v46  ;;  %1330 = vmatpush.bf16.msrb.mxu1 %v2563_v8  ;;  %v1429_v46 = vadd.f32 %v1428_v0, %v3506_v45  ;;  %v1436_v8 = vmul.f32 %v3506_v45, %v3506_v45  ;;  %v1438_v22 = vadd.f32 %v1437_v41, %v1435_v1  ;;  %p3203_p1 = pnand %p3202_p0, %p3332_p5  ;;  %p3208_p7 = por %p3207_p4, %p3206_p3 }
  0xf2   : > { %1344 = vmatpush.bf16.msrb.mxu2 %v2691_v3  ;;  %1358 = vmatpush.bf16.msrb.mxu3 %v2819_v44 }
  0xf3   : > { %1430 = vadd.xlane.f32.xlu2 %v1429_v46  ;;  %v1439_v44 = vadd.f32 %v1438_v22, %v1436_v8  ;;  %p3204_p2 = pneg %p3203_p1 }
  0xf5   : > { %1317 = vmatpush.bf16.msrb.mxu0 %v2419_v55  ;;  %1331 = vmatpush.bf16.msrb.mxu1 %v2547_v56  ;;  %p3209_p8 = pnand %p3208_p7, %p3204_p2 }
  0xf6   : > { %1345 = vmatpush.bf16.msrb.mxu2 %v2675_v57  ;;  %1359 = vmatpush.bf16.msrb.mxu3 %v2803_v58 }
  0xf7   : > { %1440 = vadd.xlane.f32.xlu0 %v1439_v44 }
  0xf8   : > { %1318 = vmatmul.bf16.vlgmr.msrb.gmra.mxu0 %v3445_v52  ;;  %1332 = vmatmul.bf16.vlgmr.msrb.gmra.mxu1 %v3447_v10 }
  0xf9   : > { %1346 = vmatmul.bf16.vlgmr.msrb.gmra.mxu2 %v3449_v21  ;;  %1360 = vmatmul.bf16.vlgmr.msrb.gmra.mxu3 %v3451_v53 }
 0x134   : > { %v1151_v59 = vpop.f32.mrf.mxu0  ;;  %v1165_v60 = vpop.f32.mrf.mxu1 }
 0x135   : > { %v1152_v5 = vadd.f32 %v1151_v59, %v494_v62 }
 0x137   : > { %v1166_v21 = vadd.f32 %v1165_v60, %v1152_v5  ;;  %v1451_v5 = vpack.c.bf16 %v3487_v31, %v3487_v31 }
 0x13b   : > { %v1179_v63 = vpop.f32.mrf.mxu2  ;;  %v1193_v4 = vpop.f32.mrf.mxu3 }
 0x13c   : > { %v1153_v52 = vpop.f32.mrf.mxu0  ;;  %v1167_v10 = vpop.f32.mrf.mxu1  ;;  %v1180_v7 = vadd.f32 %v1179_v63, %v1166_v21  ;;  %v497_v21 = vperm.slane %v3472_v61, 3 }
 0x13d   : > { %v1154_v6 = vadd.f32 %v1153_v52, %v494_v62  ;;  %v1452_v52 = vpack.c.bf16 %v3489_v32, %v3489_v32 }
 0x13e   : > { %v3476_v16 = vadd.f32 %v1193_v4, %v1180_v7 }
 0x13f   : > { %v1168_v53 = vadd.f32 %v1167_v10, %v1154_v6  ;;  %v1453_v6 = vpack.c.bf16 %v3497_v40, %v3497_v40 }
 0x143   : > { %v1181_v11 = vpop.f32.mrf.mxu2  ;;  %v1195_v12 = vpop.f32.mrf.mxu3 }
 0x144   : > { %v1182_v13 = vadd.f32 %v1181_v11, %v1168_v53  ;;  %v1207_v14 = vpop.f32.mrf.mxu0  ;;  %v1221_v15 = vpop.f32.mrf.mxu1 }
 0x145   : > { %v1208_v24 = vadd.f32 %v1207_v14, %v495_v18 }
 0x146   : > { %v3478_v17 = vadd.f32 %v1195_v12, %v1182_v13 }
 0x147   : > { %v1222_v28 = vadd.f32 %v1221_v15, %v1208_v24 }
 0x148   : > { %v1455_v19 = vpack.c.bf16 %v3478_v17, %v3476_v16  ;;  %v1382_v1 = vmul.f32 %v3478_v17, %v3478_v17 }
 0x14a   : > { %1466 = vmatpush.bf16.xpose.msra.mxu0 %v1455_v19 }
 0x14b   : > { %v1235_v20 = vpop.f32.mrf.mxu2  ;;  %v1249_v23 = vpop.f32.mrf.mxu3 }
 0x14c   : > { %v1209_v25 = vpop.f32.mrf.mxu0  ;;  %v1223_v27 = vpop.f32.mrf.mxu1  ;;  %v1236_v29 = vadd.f32 %v1235_v20, %v1222_v28 }
 0x14d   : > { %v1210_v26 = vadd.f32 %v1209_v25, %v495_v18 }
 0x14e   : > { %v3502_v42 = vadd.f32 %v1249_v23, %v1236_v29  ;;  %v1378_v23 = vmul.f32 %v3476_v16, %v3476_v16 }
 0x14f   : > { %v1224_v30 = vadd.f32 %v1223_v27, %v1210_v26 }
 0x150   : > { %v1379_v13 = vmul.f32 %v3502_v42, %v3502_v42  ;;  %v1366_v20 = vadd.f32 %v3502_v42, %v3476_v16 }
 0x151   : > { %1467 = vmatmul.bf16.vlgmr.msra.gmra.mxu0 %v1451_v5 }
 0x152   : > { %v1386_v27 = vadd.f32 %v1379_v13, %v1378_v23 }
 0x153   : > { %v1237_v33 = vpop.f32.mrf.mxu2  ;;  %v1251_v35 = vpop.f32.mrf.mxu3 }
 0x154   : > { %v1238_v39 = vadd.f32 %v1237_v33, %v1224_v30 }
 0x155   : > { %v1263_v43 = vpop.f32.mrf.mxu0  ;;  %v1277_v3 = vpop.f32.mrf.mxu1 }
 0x156   : > { %v3504_v2 = vadd.f32 %v1251_v35, %v1238_v39  ;;  %v1264_v51 = vadd.f32 %v1263_v43, %v496_v48 }
 0x158   : > { %v1456_v47 = vpack.c.bf16 %v3504_v2, %v3502_v42  ;;  %v1278_v55 = vadd.f32 %v1277_v3, %v1264_v51  ;;  %v1383_v37 = vmul.f32 %v3504_v2, %v3504_v2  ;;  %v1371_v0 = vadd.f32 %v3504_v2, %v3478_v17 }
 0x15a   : > { %1479 = vmatpush.bf16.xpose.msra.mxu1 %v1456_v47  ;;  %v1391_v22 = vadd.f32 %v1383_v37, %v1382_v1 }
 0x15d   : > { %v1265_v9 = vpop.f32.mrf.mxu0  ;;  %v1279_v56 = vpop.f32.mrf.mxu1 }
 0x15e   : > { %v1291_v49 = vpop.f32.mrf.mxu2  ;;  %v1305_v50 = vpop.f32.mrf.mxu3  ;;  %v1266_v54 = vadd.f32 %v1265_v9, %v496_v48 }
 0x15f   : > { %v1292_v57 = vadd.f32 %v1291_v49, %v1278_v55  ;;  %v269_v55 = vld [vmem:[%s4675_s4] sm:$0xf] }
 0x160   : > { %v1280_v58 = vadd.f32 %v1279_v56, %v1266_v54  ;;  %v1578_v54 = vlaneseq  ;;  %v3580_v5 = vperm.slane %v269_v55, 2 }
 0x161   : > { %v3514_v63 = vadd.f32 %v1305_v50, %v1292_v57  ;;  %1480 = vmatmul.bf16.vlgmr.msra.gmra.mxu1 %v1452_v52  ;;  %v1454_v50 = vpack.c.bf16 %v3506_v45, %v3506_v45  ;;  %v3582_v52 = vperm.slane %v269_v55, 3 }
 0x162   : > { %v3565_v56 = vshrl.u32 %v1578_v54, 7 }
 0x163   : > { %v1380_v61 = vmul.f32 %v3514_v63, %v3514_v63  ;;  %v1367_v26 = vadd.f32 %v1366_v20, %v3514_v63 }
 0x164   : > { %3110 = vset.pattern.permute.xlu0 %v3565_v56  ;;  %3108 = vset.pattern.permute.xlu1 %v3565_v56 }
 0x165   : > { %v1387_v30 = vadd.f32 %v1386_v27, %v1380_v61 }
 0x166   : > { %v1293_v59 = vpop.f32.mrf.mxu2  ;;  %v1307_v62 = vpop.f32.mrf.mxu3 }
 0x167   : > { %v1294_v60 = vadd.f32 %v1293_v59, %v1280_v58  ;;  %v1431_v51 = vpop.xlane.xlu2 %1430  ;;  %v3569_v58 = vperm.slane %v269_v55, 1  ;;  %v3574_v59 = vadd.s32 8, %v3565_v56 }
 0x168   : > { %v3560_v9 = vmul.f32 %v1431_v51, %v3423_v34 }
 0x169   : > { %v3516_v4 = vadd.f32 %v1307_v62, %v1294_v60  ;;  %3109 = vset.pattern.permute.xlu2 %v3574_v59 }
 0x16a   : > { %v1444_v57 = vsub.f32 %v3489_v32, %v3560_v9  ;;  %v1445_v60 = vsub.f32 %v3497_v40, %v3560_v9  ;;  %v1446_v62 = vsub.f32 %v3506_v45, %v3560_v9  ;;  %v1443_v32 = vsub.f32 %v3487_v31, %v3560_v9 }
 0x16b   : > { %v1457_v10 = vpack.c.bf16 %v3516_v4, %v3514_v63  ;;  %v1384_v41 = vmul.f32 %v3516_v4, %v3516_v4  ;;  %v1372_v8 = vadd.f32 %v1371_v0, %v3516_v4  ;;  %v4683_v1 = vperm.slane %v3560_v9, 7 }
 0x16c   : > { %v1449_v40 = vmul.f32 %v1445_v60, %v3580_v5 }
 0x16d   : > { %1492 = vmatpush.bf16.xpose.msra.mxu2 %v1457_v10  ;;  %v1392_v48 = vadd.f32 %v1391_v22, %v1384_v41  ;;  %v3587_v10 = vperm.slane %v269_v55, 0 }
 0x16f   : > { %v3593_v45 = vmul.f32 %v1443_v32, %v3587_v10 }
 0x174   : > { %1493 = vmatmul.bf16.vlgmr.msra.gmra.mxu2 %v1453_v6  ;;  %v1448_v6 = vmul.f32 %v1444_v57, %v3569_v58  ;;  %v4685_v57 = vperm.slane %v3560_v9, 6 }
 0x175   : > { %v1319_v7 = vpop.f32.mrf.mxu0  ;;  %v1333_v11 = vpop.f32.mrf.mxu1 }
 0x176   : > { %v1320_v53 = vadd.f32 %v1319_v7, %v497_v21 }
 0x178   : > { %v1334_v12 = vadd.f32 %v1333_v11, %v1320_v53  ;;  %v1450_v53 = vmul.f32 %v1446_v62, %v3582_v52  ;;  %v3595_v11 = vrot.slane %v1448_v6, 7 }
 0x17a   : > { %v3599_v13 = vrot.slane %v1450_v53, 5  ;;  %v1970_v31 = vsel %vm1960_vm7, %v3595_v11, %v3593_v45 }
 0x17c   : > { %v1347_v14 = vpop.f32.mrf.mxu2  ;;  %v1361_v15 = vpop.f32.mrf.mxu3 }
 0x17d   : > { %v1348_v18 = vadd.f32 %v1347_v14, %v1334_v12  ;;  %v1321_v19 = vpop.f32.mrf.mxu0  ;;  %v1335_v33 = vpop.f32.mrf.mxu1  ;;  %v3597_v12 = vrot.slane %v1449_v40, 6 }
 0x17e   : > { %v1322_v25 = vadd.f32 %v1321_v19, %v497_v21 }
 0x17f   : > { %v3535_v24 = vadd.f32 %v1361_v15, %v1348_v18  ;;  %v1971_v18 = vsel %vm1934_vm8, %v3597_v12, %v3599_v13 }
 0x180   : > { %v1336_v35 = vadd.f32 %v1335_v33, %v1322_v25  ;;  %v1973_v19 = vsel %vm1972_vm9, %v1971_v18, %v1970_v31  ;;  %v1441_v33 = vpop.xlane.xlu0 %1440 }
 0x181   : > { %v1368_v28 = vadd.f32 %v1367_v26, %v3535_v24  ;;  %v1381_v29 = vmul.f32 %v3535_v24, %v3535_v24  ;;  %v3621_v37 = vrot.slane %v1973_v19, 7  ;;  %v1929_v19 = vsel %vm1928_vm11, %v3593_v45, %v3595_v11 }
 0x183   : > { %1369 = vadd.xlane.f32.xlu2 %v1368_v28  ;;  %v1388_v36 = vadd.f32 %v1387_v30, %v1381_v29  ;;  %v4679_v22 = vperm.slane %v3621_v37, 2  ;;  %v4678_v60 = vperm.slane %v3621_v37, 3 }
 0x184   : > { %v1349_v38 = vpop.f32.mrf.mxu2  ;;  %v1363_v43 = vpop.f32.mrf.mxu3 }
 0x185   : > { %v1350_v39 = vadd.f32 %v1349_v38, %v1336_v35  ;;  %1389 = vadd.xlane.f32.xlu0 %v1388_v36  ;;  %v3619_v36 = vmul.f32 %v1441_v33, %v3423_v34  ;;  %v1513_v33 = vperm.slane %v3560_v9, 1 }
 0x187   : > { %v3549_v46 = vadd.f32 %v1363_v43, %v1350_v39  ;;  %v4682_v43 = vperm.slane %v3619_v36, 7  ;;  %v4684_v62 = vperm.slane %v3619_v36, 6 }
 0x189   : > { %v1458_v47 = vpack.c.bf16 %v3549_v46, %v3535_v24  ;;  %v1373_v3 = vadd.f32 %v1372_v8, %v3549_v46  ;;  %v1385_v44 = vmul.f32 %v3549_v46, %v3549_v46  ;;  %v4681_v8 = vperm.slane %v3621_v37, 0 }
 0x18b   : > { %1505 = vmatpush.bf16.xpose.msra.mxu3 %v1458_v47  ;;  %1374 = vadd.xlane.f32.xlu2 %v1373_v3  ;;  %v1393_v49 = vadd.f32 %v1392_v48, %v1385_v44 }
 0x18d   : > { %1394 = vadd.xlane.f32.xlu1 %v1393_v49 }
 0x192   : > { %1506 = vmatmul.bf16.vlgmr.msra.gmra.mxu3 %v1454_v50 }
 0x1ce   : > { %v1468_v21 = vpop.f32.mrf.mxu0 }
 0x1d6   : > { %v1470_v15 = vpop.f32.mrf.mxu0 }
 0x1de   : > { %v1481_v7 = vpop.f32.mrf.mxu1 }
 0x1df   : > { %v1482_v27 = vadd.f32 %v1481_v7, %v1468_v21 }
 0x1e6   : > { %v1483_v14 = vpop.f32.mrf.mxu1 }
 0x1f6   : > { %v3607_v23 = vpop.xlane.xlu2 %1369 }
 0x1f7   : > { %v1494_v20 = vpop.f32.mrf.mxu2 }
 0x1f8   : > { %v1495_v38 = vadd.f32 %v1494_v20, %v1482_v27  ;;  %v1935_v20 = vsel %vm1934_vm8, %v3593_v45, %v3595_v11  ;;  %v1941_v27 = vsel %vm1930_vm12, %v3593_v45, %v3595_v11 }
 0x1fe   : > { %v1375_v25 = vpop.xlane.xlu2 %1374 }
 0x1ff   : > { %v1496_v61 = vpop.f32.mrf.mxu2  ;;  %v3610_v26 = vmul.f32 %v1375_v25, %v3423_v34 }
 0x200   : > { %v1395_v35 = vpop.xlane.xlu1 %1394 }
 0x201   : > { %4710 = vst [vmem:[#allocation8_spill] sm:$0xff] %v3610_v26  ;;  %v1402_v28 = vsub.f32 %v3478_v17, %v3610_v26  ;;  %v1403_v29 = vsub.f32 %v3504_v2, %v3610_v26  ;;  %v1404_v30 = vsub.f32 %v3516_v4, %v3610_v26  ;;  %v1405_v39 = vsub.f32 %v3549_v46, %v3610_v26 }
 0x202   : > { %v3626_v0 = vmul.f32 %v1395_v35, %v3423_v34  ;;  %v4680_v46 = vperm.slane %v3621_v37, 1  ;;  %v3648_v44 = vadd.f32 %v4683_v1, %v3610_v26  ;;  %v3681_v6 = vadd.f32 %v4685_v57, %v3610_v26 }
 0x203   : > { %v3629_v17 = vmul.f32 %v3587_v10, %v1402_v28  ;;  %v3632_v2 = vmul.f32 %v3569_v58, %v1403_v29  ;;  %v3635_v4 = vmul.f32 %v3580_v5, %v1404_v30  ;;  %v3643_v3 = vmul.f32 %v3582_v52, %v1405_v39 }
 0x204   : > { %4711 = vst [vmem:[#allocation9_spill] sm:$0xff] %v3626_v0  ;;  %v3653_v48 = vadd.f32 %v4682_v43, %v3626_v0  ;;  %v3686_v21 = vadd.f32 %v4684_v62, %v3626_v0  ;;  %v1943_v28 = vsel %vm1942_vm15, %v3597_v12, %v3599_v13  ;;  %v1512_v29 = vperm.slane %v3560_v9, 0  ;;  %v1390_v62 = vpop.xlane.xlu0 %1389 }
 0x205   : > { %4712 = vst [vmem:[#allocation10_spill] sm:$0xff] %v3629_v17  ;;  %v3658_v49 = vadd.f32 %v4681_v8, %v3629_v17  ;;  %v3663_v50 = vadd.f32 %v4680_v46, %v3632_v2  ;;  %v3668_v51 = vadd.f32 %v4679_v22, %v3635_v4  ;;  %v3676_v32 = vadd.f32 %v4678_v60, %v3643_v3 }
 0x206   : > { %4713 = vst [vmem:[#allocation11_spill] sm:$0xff] %v3632_v2  ;;  %v1545_v30 = vperm.slane %v3619_v36, 0  ;;  %v1947_v35 = vsel %vm1936_vm10, %v3593_v45, %v3595_v11  ;;  %v1965_v60 = vsel %vm1954_vm3, %v3593_v45, %v3595_v11  ;;  %v1966_v22 = vsel %vm1928_vm11, %v3597_v12, %v3599_v13 }
 0x207   : > { %4714 = vst [vmem:[#allocation12_spill] sm:$0xff] %v3635_v4 }
 0x208   : > { %4715 = vst [vmem:[#allocation13_spill] sm:$0xff] %v3643_v3 }
 0x209   : > { %4716 = vst [vmem:[#allocation14_spill] sm:$0xff] %v3648_v44 }
 0x20a   : > { %4717 = vst [vmem:[#allocation15_spill] sm:$0xff] %v3653_v48 }
 0x20b   : > { %4718 = vst [vmem:[#allocation16_spill] sm:$0xff] %v3658_v49 }
 0x20c   : > { %4719 = vst [vmem:[#allocation17_spill] sm:$0xff] %v3663_v50 }
 0x20d   : > { %4720 = vst [vmem:[#allocation18_spill] sm:$0xff] %v3668_v51 }
 0x20e   : > { %4721 = vst [vmem:[#allocation19_spill] sm:$0xff] %v3676_v32 }
 0x20f   : > { %4722 = vst [vmem:[#allocation20_spill] sm:$0xff] %v3681_v6 }
 0x210   : > { %4723 = vst [vmem:[#allocation21_spill] sm:$0xff] %v3686_v21 }
 0x215   : > { %v1507_v41 = vpop.f32.mrf.mxu3 }
 0x216   : > { %v1508_v47 = vadd.f32 %v1507_v41, %v1495_v38  ;;  %v1949_v38 = vsel %vm1948_vm0, %v3597_v12, %v3599_v13 }
 0x218   : > { %v1577_v54 = vperm.slane %v1508_v47, 0  ;;  %v1590_v55 = vperm.slane %v1508_v47, 1  ;;  %v1603_v40 = vperm.slane %v1508_v47, 2  ;;  %v1616_v53 = vperm.slane %v1508_v47, 3 }
 0x219   : > { %v1629_v31 = vperm.slane %v1508_v47, 4  ;;  %v1668_v14 = vperm.slane %v1508_v47, 7  ;;  %v1642_v15 = vperm.slane %v1508_v47, 5  ;;  %v1655_v18 = vperm.slane %v1508_v47, 6 }
 0x21a   : > { %1582 = vperm.xlu1 %3108, %v1577_v54   ;;  %1595 = vperm.xlu0 %3110, %v1590_v55  }
 0x21b   : > { %1588 = vperm.xlu2 %3109, %v1577_v54   ;;  %v1945_v54 = vsel %vm1944_vm1, %v1941_v27, %v1943_v28 }
 0x21d   : > { %v1509_v7 = vpop.f32.mrf.mxu3 }
 0x222   : > { %1608 = vperm.xlu1 %3108, %v1603_v40   ;;  %3111 = vset.pattern.permute.xlu0 %v3574_v59 }
 0x223   : > { %1601 = vperm.xlu2 %3109, %v1590_v55  }
 0x22a   : > { %1621 = vperm.xlu1 %3108, %v1616_v53   ;;  %1640 = vperm.xlu0 %3111, %v1629_v31  }
 0x22b   : > { %1614 = vperm.xlu2 %3109, %v1603_v40   ;;  %v1546_v40 = vperm.slane %v3619_v36, 1 }
 0x232   : > { %1634 = vperm.xlu1 %3108, %v1629_v31   ;;  %3114 = vset.pattern.permute.xlu0 %v3565_v56  ;;  %v1959_v31 = vsel %vm1948_vm0, %v3593_v45, %v3595_v11 }
 0x233   : > { %1627 = vperm.xlu2 %3109, %v1616_v53   ;;  %v1951_v53 = vsel %vm1950_vm2, %v1947_v35, %v1949_v38 }
 0x234   : > { %v3748_v35 = vrot.slane %v1951_v53, 3 }
 0x23a   : > { %3113 = vset.pattern.permute.xlu1 %v3574_v59  ;;  %1673 = vperm.xlu0 %3114, %v1668_v14  }
 0x23b   : > { %3112 = vset.pattern.permute.xlu2 %v3565_v56  ;;  %v1931_v56 = vsel %vm1930_vm12, %v3597_v12, %v3599_v13 }
 0x23c   : > { %v3705_v61 = vsel %vm1932_vm13, %v1929_v19, %v1931_v56  ;;  %v3736_v19 = vrot.slane %v1945_v54, 2  ;;  %v4694_v56 = vperm.slane %v3560_v9, 3  ;;  %v3752_v54 = vmul.f32 %v3607_v23, %v3423_v34 }
 0x23d   : > { %v1975_v39 = vperm.slane %v3705_v61, 0  ;;  %v1976_v41 = vperm.slane %v3705_v61, 1  ;;  %v1977_v55 = vperm.slane %v3705_v61, 2  ;;  %v4686_v7 = vperm.slane %v3705_v61, 3 }
 0x23e   : > { %v4690_v8 = vperm.slane %v3736_v19, 0  ;;  %v4692_v23 = vperm.slane %v3736_v19, 2  ;;  %v4693_v43 = vperm.slane %v3736_v19, 3  ;;  %v1398_v57 = vsub.f32 %v3476_v16, %v3752_v54 }
 0x23f   : > { %v1401_v16 = vsub.f32 %v3535_v24, %v3752_v54  ;;  %v1530_v24 = vadd.f32 %v1513_v33, %v3752_v54 }
 0x242   : > { %1653 = vperm.xlu1 %3113, %v1642_v15   ;;  %3116 = vset.pattern.permute.xlu0 %v3574_v59 }
 0x243   : > { %1647 = vperm.xlu2 %3112, %v1642_v15   ;;  %v1514_v15 = vperm.slane %v3560_v9, 2 }
 0x24a   : > { %1666 = vperm.xlu1 %3113, %v1655_v18  }
 0x24b   : > { %1660 = vperm.xlu2 %3112, %v1655_v18   ;;  %v4689_v18 = vperm.slane %v3619_v36, 2 }
 0x253   : > { %3115 = vset.pattern.permute.xlu2 %v3574_v59  ;;  %v1937_v59 = vsel %vm1936_vm10, %v3597_v12, %v3599_v13 }
 0x254   : > { %v1939_v25 = vsel %vm1938_vm14, %v1935_v20, %v1937_v59  ;;  %v1953_v59 = vsel %vm1942_vm15, %v3593_v45, %v3595_v11  ;;  %v3815_v45 = vmul.f32 %v3582_v52, %v1401_v16 }
 0x255   : > { %v3723_v47 = vrot.slane %v1939_v25, 1  ;;  %v1955_v25 = vsel %vm1954_vm3, %v3597_v12, %v3599_v13 }
 0x257   : > { %v1979_v20 = vperm.slane %v3723_v47, 0  ;;  %v4687_v27 = vperm.slane %v3723_v47, 1  ;;  %v4695_v28 = vperm.slane %v3723_v47, 2  ;;  %v4688_v46 = vperm.slane %v3723_v47, 3 }
 0x25b   : > { %1679 = vperm.xlu2 %3115, %v1668_v14   ;;  %v1961_v14 = vsel %vm1960_vm7, %v3599_v13, %v3597_v12  ;;  %v1968_v13 = vsel %vm1967_vm6, %v1966_v22, %v1965_v60  ;;  %v1400_v22 = vsub.f32 %v3514_v63, %v3752_v54  ;;  %v3796_v12 = vmul.f32 %v3587_v10, %v1398_v57 }
 0x25c   : > { %v1963_v38 = vsel %vm1962_vm4, %v1959_v31, %v1961_v14  ;;  %v1957_v31 = vsel %vm1956_vm5, %v1953_v59, %v1955_v25  ;;  %v4691_v14 = vperm.slane %v3736_v19, 1  ;;  %v3787_v25 = vrot.slane %v1968_v13, 6 }
 0x25d   : > { %v3766_v1 = vrot.slane %v1963_v38, 5  ;;  %v3775_v53 = vrot.slane %v1957_v31, 4  ;;  %v1399_v38 = vsub.f32 %v3502_v42, %v3752_v54  ;;  %v3790_v31 = vmul.f32 %v1390_v62, %v3423_v34 }
 0x25e   : > { %v1528_v63 = vadd.f32 %v1512_v29, %v3752_v54  ;;  %v3812_v57 = vmul.f32 %v3580_v5, %v1400_v22  ;;  %v3834_v16 = vadd.f32 %v1975_v39, %v3796_v12  ;;  %v3841_v60 = vmul.f32 %v1530_v24, %v1530_v24 }
 0x25f   : > { %4724 = vst [vmem:[#allocation22_spill] sm:$0xff] %v3766_v1  ;;  %v3806_v62 = vmul.f32 %v3569_v58, %v1399_v38  ;;  %v1529_v58 = vadd.f32 %v1512_v29, %v3610_v26  ;;  %v3825_v38 = vadd.f32 %v1545_v30, %v3790_v31  ;;  %v3839_v29 = vadd.f32 %v1546_v40, %v3790_v31 }
 0x260   : > { %v3829_v52 = vmul.f32 %v1528_v63, %v1528_v63  ;;  %v1562_v10 = vadd.f32 %v1545_v30, %v3626_v0  ;;  %v3854_v42 = vadd.f32 %v1979_v20, %v3796_v12  ;;  %v1531_v24 = vadd.f32 %v1513_v33, %v3610_v26 }
 0x261   : > { %v3849_v63 = vadd.f32 %v1976_v41, %v3806_v62  ;;  %v3862_v11 = vadd.f32 %v1977_v55, %v3812_v57  ;;  %v3867_v30 = vadd.f32 %v4686_v7, %v3815_v45  ;;  %v1714_v13 = vmul.f32 %v1529_v58, %v1529_v58 }
 0x262   : > { %4725 = vst [vmem:[#allocation23_spill] sm:$0xff] %v3854_v42  ;;  %v3877_v33 = vadd.f32 %v4695_v28, %v3812_v57  ;;  %v3882_v59 = vadd.f32 %v4688_v46, %v3815_v45  ;;  %v1532_v7 = vadd.f32 %v1514_v15, %v3752_v54  ;;  %v3900_v58 = vadd.f32 %v4691_v14, %v3806_v62 }
 0x263   : > { %4726 = vst [vmem:[#allocation24_spill] sm:$0xff] %v3862_v11  ;;  %v1533_v46 = vadd.f32 %v1514_v15, %v3610_v26  ;;  %v3918_v14 = vadd.f32 %v1975_v39, %v3629_v17  ;;  %v1564_v15 = vadd.f32 %v1546_v40, %v3626_v0  ;;  %v3936_v39 = vadd.f32 %v1977_v55, %v3635_v4 }
 0x264   : > { %4727 = vst [vmem:[#allocation25_spill] sm:$0xff] %v3867_v30  ;;  %v3941_v40 = vadd.f32 %v1979_v20, %v3629_v17  ;;  %v4737_v55 = vperm.slane %v3723_v47, 2  ;;  %v4738_v20 = vperm.slane %v3560_v9, 3 }
 0x265   : > { %4729 = vst [vmem:[#allocation27_spill] sm:$0xff] %v3877_v33  ;;  %v1718_v49 = vmul.f32 %v1533_v46, %v1533_v46  ;;  %v4757_v33 = vperm.slane %v3748_v35, 1 }
 0x266   : > { %4730 = vst [vmem:[#allocation28_spill] sm:$0xff] %v3882_v59  ;;  %v3956_v32 = vadd.f32 %v4737_v55, %v3635_v4  ;;  %v1535_v51 = vadd.f32 %v4738_v20, %v3610_v26  ;;  %v4741_v55 = vperm.slane %v3736_v19, 0  ;;  %v4742_v20 = vperm.slane %v3736_v19, 1 }
 0x267   : > { %4732 = vst [vmem:[#allocation30_spill] sm:$0xff] %v3900_v58  ;;  %v4755_v59 = vperm.slane %v3748_v35, 0 }
 0x268   : > { %v3973_v48 = vadd.f32 %v4741_v55, %v3629_v17  ;;  %v3978_v6 = vadd.f32 %v4742_v20, %v3632_v2  ;;  %v4745_v55 = vperm.slane %v3619_v36, 3  ;;  %v4746_v20 = vperm.slane %v3748_v35, 0 }
 0x269   : > { %v4000_v58 = vmul.f32 %v1535_v51, %v1535_v51  ;;  %v4754_v51 = vperm.slane %v3619_v36, 3 }
 0x26b   : > { %v4022_v44 = vadd.f32 %v4754_v51, %v3790_v31 }
 0x275   : > { %v1589_v22 = vpop.permute.xlu2 %1588 }
 0x276   : > { %v1682_v5 = vmul.f32 0.00390625, %v1589_v22  ;;  %v3872_v22 = vadd.f32 %v4687_v27, %v3806_v62  ;;  %v3890_v27 = vadd.f32 %v4689_v18, %v3790_v31  ;;  %v3908_v18 = vadd.f32 %v4692_v23, %v3812_v57 }
 0x278   : > { %4728 = vst [vmem:[#allocation26_spill] sm:$0xff] %v3872_v22  ;;  %v1698_v34 = vadd.f32 %v1682_v5, %v1562_v10  ;;  %v3895_v10 = vadd.f32 %v4690_v8, %v3796_v12  ;;  %v3913_v8 = vadd.f32 %v4693_v43, %v3815_v45  ;;  %v3931_v43 = vadd.f32 %v1976_v41, %v3632_v2 }
 0x279   : > { %4733 = vst [vmem:[#allocation31_spill] sm:$0xff] %v3908_v18  ;;  %v4736_v41 = vperm.slane %v3723_v47, 1  ;;  %v3998_v18 = vadd.f32 %v4746_v20, %v3629_v17  ;;  %v4017_v20 = vmul.f32 %v1532_v7, %v1532_v7  ;;  %v4759_v7 = vperm.slane %v3748_v35, 2 }
 0x27a   : > { %4731 = vst [vmem:[#allocation29_spill] sm:$0xff] %v3895_v10  ;;  %v1730_v5 = vsub.f32 %v1698_v34, %v1714_v13  ;;  %v1716_v34 = vmul.f32 %v1531_v24, %v1531_v24  ;;  %v1534_v13 = vadd.f32 %v4694_v56, %v3752_v54  ;;  %v4735_v24 = vperm.slane %v3705_v61, 3 }
 0x27b   : > { %4734 = vst [vmem:[#allocation32_spill] sm:$0xff] %v3913_v8  ;;  %v3951_v28 = vadd.f32 %v4736_v41, %v3632_v2  ;;  %v4740_v41 = vperm.slane %v3619_v36, 2  ;;  %v3993_v8 = vadd.f32 %v4745_v55, %v3626_v0 }
 0x27c   : > { %v3926_v23 = vadd.f32 1e-05, %v1730_v5  ;;  %v3946_v5 = vadd.f32 %v4735_v24, %v3643_v3  ;;  %v4739_v24 = vperm.slane %v3723_v47, 3  ;;  %v4743_v47 = vperm.slane %v3736_v19, 2  ;;  %4747 = vst [vmem:[#allocation33_spill] sm:$0xff] %v3998_v18 }
 0x27d   : > { %v1602_v56 = vpop.permute.xlu2 %1601  ;;  %v1566_v21 = vadd.f32 %v4740_v41, %v3626_v0 }
 0x27e   : > { %3123 = vrsqrt.f32 %v3926_v23  ;;  %v1684_v61 = vmul.f32 0.00390625, %v1602_v56  ;;  %v3965_v50 = vadd.f32 %v4739_v24, %v3643_v3  ;;  %v3983_v56 = vadd.f32 %v4743_v47, %v3635_v4 }
 0x27f   : > { %v4744_v24 = vperm.slane %v3736_v19, 3  ;;  %v4750_v19 = vperm.slane %v3748_v35, 2  ;;  %vm1777_vm8 = vweird.f32 %v3926_v23 }
 0x280   : > { %v1700_v46 = vadd.f32 %v1684_v61, %v1564_v15  ;;  %v4748_v15 = vperm.slane %v3748_v35, 1 }
 0x281   : > { %v3988_v41 = vadd.f32 %v4744_v24, %v3643_v3  ;;  %v4010_v47 = vadd.f32 %v4750_v19, %v3635_v4  ;;  %v4752_v24 = vperm.slane %v3748_v35, 3  ;;  %v4029_v19 = vadd.f32 %v4755_v59, %v3796_v12 }
 0x282   : > { %v4005_v61 = vadd.f32 %v4748_v15, %v3632_v2  ;;  %v1732_v10 = vsub.f32 %v1700_v46, %v1716_v34  ;;  %v4024_v15 = vmul.f32 %v1534_v13, %v1534_v13  ;;  %v4039_v34 = vadd.f32 %v4759_v7, %v3812_v57 }
 0x283   : > { %4751 = vst [vmem:[#allocation35_spill] sm:$0xff] %v4010_v47  ;;  %v4015_v55 = vadd.f32 %v4752_v24, %v3643_v3  ;;  %v4034_v24 = vadd.f32 %v4757_v33, %v3806_v62  ;;  %v4761_v46 = vperm.slane %v3560_v9, 5  ;;  %v4762_v59 = vperm.slane %v3748_v35, 3 }
 0x284   : > { %4749 = vst [vmem:[#allocation34_spill] sm:$0xff] %v4005_v61  ;;  %v3124_v51 = vpop.eup %3123  ;;  %v4044_v22 = vadd.f32 1e-05, %v1732_v10  ;;  %v4764_v33 = vperm.slane %v3619_v36, 5  ;;  %v4765_v7 = vperm.slane %v3560_v9, 4  ;;  %v4766_v10 = vperm.slane %v3766_v1, 0 }
 0x285   : > { %4753 = vst [vmem:[#allocation36_spill] sm:$0xff] %v4015_v55  ;;  %v1538_v13 = vadd.f32 %v4761_v46, %v3752_v54  ;;  %v1772_v42 = vmul.f32 %v3124_v51, %v3926_v23  ;;  %v1615_v46 = vpop.permute.xlu2 %1614  ;;  %v4768_v35 = vperm.slane %v3766_v1, 1  ;;  %vm1778_vm7 = vweird.f32 %v3124_v51 }
 0x286   : > { %4756 = vst [vmem:[#allocation37_spill] sm:$0xff] %v4029_v19  ;;  %v4049_v19 = vadd.f32 %v4762_v59, %v3815_v45  ;;  %v4063_v55 = vadd.f32 %v4766_v10, %v3796_v12  ;;  %3125 = vrsqrt.f32 %v4044_v22  ;;  %v4774_v10 = vperm.slane %v3619_v36, 4  ;;  %vm1779_vm9 = vmor %vm1777_vm8, %vm1778_vm7 }
 0x287   : > { %4758 = vst [vmem:[#allocation38_spill] sm:$0xff] %v4034_v24  ;;  %v4054_v24 = vadd.f32 %v4764_v33, %v3790_v31  ;;  %v4068_v59 = vadd.f32 %v4768_v35, %v3806_v62  ;;  %v4770_v33 = vperm.slane %v3766_v1, 2  ;;  %v1773_v35 = vmul.f32 %v3124_v51, %v1772_v42 }
 0x288   : > { %4760 = vst [vmem:[#allocation39_spill] sm:$0xff] %v4039_v34  ;;  %v1537_v34 = vadd.f32 %v4765_v7, %v3610_v26  ;;  %v1686_v7 = vmul.f32 0.00390625, %v1615_v46  ;;  %v4772_v26 = vperm.slane %v3766_v1, 3  ;;  %v4777_v46 = vperm.slane %v3560_v9, 4 }
 0x289   : > { %4763 = vst [vmem:[#allocation40_spill] sm:$0xff] %v4049_v19  ;;  %v4073_v19 = vadd.f32 %v4770_v33, %v3812_v57  ;;  %v4775_v33 = vperm.slane %v3775_v53, 0  ;;  %v4780_v42 = vperm.slane %v3775_v53, 2  ;;  %vm1797_vm11 = vweird.f32 %v4044_v22 }
 0x28a   : > { %4767 = vst [vmem:[#allocation41_spill] sm:$0xff] %v4063_v55  ;;  %v4079_v47 = vadd.f32 %v4772_v26, %v3815_v45  ;;  %v4084_v55 = vadd.f32 %v4774_v10, %v3626_v0  ;;  %v1536_v1 = vadd.f32 %v4777_v46, %v3752_v54  ;;  %v1702_v26 = vadd.f32 %v1686_v7, %v1566_v21 }
 0x28b   : > { %4769 = vst [vmem:[#allocation42_spill] sm:$0xff] %v4068_v59  ;;  %v4086_v59 = vmul.f32 %v1538_v13, %v1538_v13  ;;  %v4778_v10 = vperm.slane %v3775_v53, 1  ;;  %v4106_v13 = vadd.f32 %v4780_v42, %v3635_v4  ;;  %v4782_v21 = vperm.slane %v3775_v53, 3 }
 0x28c   : > { %4771 = vst [vmem:[#allocation43_spill] sm:$0xff] %v4073_v19  ;;  %v4091_v19 = vadd.f32 %v4775_v33, %v3629_v17  ;;  %v270_v33 = vld [vmem:[%s4676_s5] sm:$0xf]  ;;  %v1774_v17 = vmul.f32 0.5, %v1773_v35  ;;  %v4784_v7 = vperm.slane %v3619_v36, 4  ;;  %v1734_v4 = vsub.f32 %v1702_v26, %v1718_v49 }
 0x28d   : > { %4773 = vst [vmem:[#allocation44_spill] sm:$0xff] %v4079_v47  ;;  %v4096_v47 = vmul.f32 %v1537_v34, %v1537_v34  ;;  %v4101_v0 = vadd.f32 %v4778_v10, %v3632_v2  ;;  %v4114_v34 = vadd.f32 %v4782_v21, %v3643_v3  ;;  %v4786_v10 = vperm.slane %v3775_v53, 0 }
 0x28e   : > { %4776 = vst [vmem:[#allocation45_spill] sm:$0xff] %v4091_v19  ;;  %v4119_v46 = vadd.f32 %v4784_v7, %v3790_v31  ;;  %v4788_v2 = vperm.slane %v3775_v53, 1  ;;  %v4790_v21 = vperm.slane %v3775_v53, 2  ;;  %v4792_v7 = vperm.slane %v3775_v53, 3 }
 0x28f   : > { %4779 = vst [vmem:[#allocation46_spill] sm:$0xff] %v4101_v0  ;;  %v4124_v42 = vadd.f32 %v4786_v10, %v3796_v12  ;;  %v4142_v49 = vmul.f32 %v1536_v1, %v1536_v1  ;;  %v3126_v10 = vpop.eup %3125  ;;  %v4153_v53 = vadd.f32 1e-05, %v1734_v4  ;;  %v1628_v0 = vpop.permute.xlu2 %1627 }
 0x290   : > { %4781 = vst [vmem:[#allocation47_spill] sm:$0xff] %v4106_v13  ;;  %v4129_v35 = vadd.f32 %v4788_v2, %v3806_v62  ;;  %v4134_v3 = vadd.f32 %v4790_v21, %v3812_v57  ;;  %v1775_v13 = vsub.f32 1.5, %v1774_v17  ;;  %v4795_v2 = vperm.slane %v3560_v9, 6 }
 0x291   : > { %4783 = vst [vmem:[#allocation48_spill] sm:$0xff] %v4114_v34  ;;  %v4139_v34 = vadd.f32 %v4792_v7, %v3815_v45  ;;  %v4149_v21 = vperm.slane %v270_v33, 1  ;;  %v1583_v7 = vpop.permute.xlu1 %1582  ;;  %v1792_v1 = vmul.f32 %v3126_v10, %v4044_v22  ;;  %3127 = vrsqrt.f32 %v4153_v53 }
 0x292   : > { %4785 = vst [vmem:[#allocation49_spill] sm:$0xff] %v4119_v46  ;;  %v1540_v26 = vadd.f32 %v4795_v2, %v3752_v54  ;;  %v1776_v17 = vmul.f32 %v3124_v51, %v1775_v13  ;;  %v4160_v2 = vperm.slane %v270_v33, 3  ;;  %v1688_v19 = vmul.f32 0.00390625, %v1628_v0 }
 0x293   : > { %4787 = vst [vmem:[#allocation50_spill] sm:$0xff] %v4124_v42  ;;  %v1681_v42 = vmul.f32 0.00390625, %v1583_v7  ;;  %v1793_v46 = vmul.f32 %v3126_v10, %v1792_v1  ;;  %vm1798_vm10 = vweird.f32 %v3126_v10  ;;  %v4801_v22 = vperm.slane %v3560_v9, 7 }
 0x294   : > { %4789 = vst [vmem:[#allocation51_spill] sm:$0xff] %v4129_v35  ;;  %v4147_v35 = vperm.slane %v270_v33, 0  ;;  %v1704_v11 = vadd.f32 %v1688_v19, %v3993_v8  ;;  %vm1799_vm12 = vmor %vm1797_vm11, %vm1798_vm10  ;;  %v4213_v1 = vmul.f32 %v1540_v26, %v1540_v26  ;;  %vm1817_vm14 = vweird.f32 %v4153_v53 }
 0x295   : > { %4791 = vst [vmem:[#allocation52_spill] sm:$0xff] %v4134_v3  ;;  %v4151_v3 = vperm.slane %v270_v33, 2  ;;  %v1697_v13 = vadd.f32 %v1681_v42, %v3825_v38  ;;  %v1794_v30 = vmul.f32 0.5, %v1793_v46 }
 0x296   : > { %4793 = vst [vmem:[#allocation53_spill] sm:$0xff] %v4139_v34  ;;  %v1596_v34 = vpop.permute.xlu0 %1595 }
 0x297   : > { %4794 = vst [vmem:[#allocation54_spill] sm:$0xff] %v4142_v49  ;;  %v1683_v4 = vmul.f32 0.00390625, %v1596_v34  ;;  %v1780_v49 = vsel %vm1779_vm9, %v3124_v51, %v1776_v17  ;;  %v1729_v33 = vsub.f32 %v1697_v13, %v3829_v52  ;;  %v4179_v52 = vpop.eup %3127 }
 0x298   : > { %v2107_v23 = vmul.f32 %v3918_v14, %v1780_v49  ;;  %v2108_v7 = vmul.f32 %v3931_v43, %v1780_v49  ;;  %v2109_v61 = vmul.f32 %v3936_v39, %v1780_v49  ;;  %v2110_v18 = vmul.f32 %v3946_v5, %v1780_v49 }
 0x299   : > { %v1699_v0 = vadd.f32 %v1683_v4, %v3839_v29  ;;  %v1795_v43 = vsub.f32 1.5, %v1794_v30  ;;  %v4175_v42 = vadd.f32 1e-05, %v1729_v33  ;;  %v1736_v39 = vsub.f32 %v1704_v11, %v4000_v58  ;;  %v1609_v8 = vpop.permute.xlu1 %1608 }
 0x29a   : > { %v2180_v51 = vadd.f32 %v4147_v35, %v2107_v23  ;;  %v2181_v34 = vadd.f32 %v4149_v21, %v2108_v7  ;;  %v2182_v38 = vadd.f32 %v4151_v3, %v2109_v61  ;;  %v2183_v14 = vadd.f32 %v4160_v2, %v2110_v18 }
 0x29b   : > { %v1731_v5 = vsub.f32 %v1699_v0, %v3841_v60  ;;  %v4796_v29 = vperm.slane %v3619_v36, 6  ;;  %v4797_v11 = vperm.slane %v3787_v25, 0  ;;  %v4798_v60 = vperm.slane %v3787_v25, 1 }
 0x29c   : > { %2244 = vst [vmem:[%s4181_s15 + $0x20] sm:$0xff] %v2180_v51  ;;  %v4799_v61 = vperm.slane %v3787_v25, 2  ;;  %v1796_v46 = vmul.f32 %v3126_v10, %v1795_v43  ;;  %v1812_v49 = vmul.f32 %v4179_v52, %v4153_v53  ;;  %3129 = vrsqrt.f32 %v4175_v42 }
 0x29d   : > { %v4187_v18 = vadd.f32 %v4796_v29, %v3790_v31  ;;  %v4192_v30 = vadd.f32 %v4797_v11, %v3796_v12  ;;  %v4197_v58 = vadd.f32 %v4798_v60, %v3806_v62  ;;  %2245 = vst [vmem:[%s4181_s15 + $0x28] sm:$0xff] %v2181_v34  ;;  %v4211_v17 = vadd.f32 1e-05, %v1736_v39  ;;  %v1648_v53 = vpop.permute.xlu2 %1647 }
 0x29e   : > { %v4202_v19 = vadd.f32 %v4799_v61, %v3812_v57  ;;  %2246 = vst [vmem:[%s4181_s15 + $0x30] sm:$0xff] %v2182_v38  ;;  %v4800_v4 = vperm.slane %v3787_v25, 3  ;;  %v1542_v23 = vadd.f32 %v4801_v22, %v3752_v54  ;;  %v1800_v7 = vsel %vm1799_vm12, %v3126_v10, %v1796_v46  ;;  %v1641_v60 = vpop.permute.xlu0 %1640 }
 0x29f   : > { %2247 = vst [vmem:[%s4181_s15 + $0x38] sm:$0xff] %v2183_v14  ;;  %v1813_v33 = vmul.f32 %v4179_v52, %v1812_v49  ;;  %v4225_v0 = vadd.f32 1e-05, %v1731_v5  ;;  %v1685_v51 = vmul.f32 0.00390625, %v1609_v8  ;;  %v2115_v34 = vmul.f32 %v3941_v40, %v1800_v7 }
 0x2a0   : > { %v4218_v13 = vadd.f32 %v4800_v4, %v3815_v45  ;;  %v2116_v26 = vmul.f32 %v3951_v28, %v1800_v7  ;;  %v2117_v38 = vmul.f32 %v3956_v32, %v1800_v7  ;;  %v2118_v43 = vmul.f32 %v3965_v50, %v1800_v7 }
 0x2a1   : > { %v1814_v39 = vmul.f32 0.5, %v1813_v33  ;;  %3131 = vrsqrt.f32 %v4211_v17  ;;  %v4802_v54 = vperm.slane %v3619_v36, 7  ;;  %v4803_v14 = vperm.slane %v3621_v37, 0  ;;  %v1622_v11 = vpop.permute.xlu1 %1621 }
 0x2a2   : > { %v2188_v28 = vadd.f32 %v4147_v35, %v2115_v34  ;;  %v2189_v32 = vadd.f32 %v4149_v21, %v2116_v26  ;;  %v2190_v50 = vadd.f32 %v4151_v3, %v2117_v38  ;;  %vm1818_vm13 = vweird.f32 %v4179_v52  ;;  %v4246_v40 = vpop.eup %3129 }
 0x2a3   : > { %v4235_v10 = vadd.f32 %v4802_v54, %v3790_v31  ;;  %v4240_v5 = vadd.f32 %v4803_v14, %v3796_v12  ;;  %v2191_v8 = vadd.f32 %v4160_v2, %v2118_v43  ;;  %v1815_v31 = vsub.f32 1.5, %v1814_v39  ;;  %vm1819_vm15 = vmor %vm1817_vm14, %vm1818_vm13 }
 0x2a4   : > { %3133 = vrsqrt.f32 %v4225_v0  ;;  %v1701_v12 = vadd.f32 %v1685_v51, %v3890_v27  ;;  %2252 = vst [vmem:[%s4181_s15 + $0x60] sm:$0xff] %v2188_v28  ;;  %v1762_v29 = vmul.f32 %v4246_v40, %v4175_v42  ;;  %v4255_v61 = vmul.f32 %v1542_v23, %v1542_v23 }
 0x2a5   : > { %v4804_v46 = vperm.slane %v3621_v37, 1  ;;  %2253 = vst [vmem:[%s4181_s15 + $0x68] sm:$0xff] %v2189_v32  ;;  %v1816_v4 = vmul.f32 %v4179_v52, %v1815_v31  ;;  %v1687_v22 = vmul.f32 0.00390625, %v1622_v11  ;;  %v1690_v7 = vmul.f32 0.00390625, %v1641_v60 }
 0x2a6   : > { %v1733_v27 = vsub.f32 %v1701_v12, %v4017_v20  ;;  %2254 = vst [vmem:[%s4181_s15 + $0x70] sm:$0xff] %v2190_v50  ;;  %v1763_v23 = vmul.f32 %v4246_v40, %v1762_v29  ;;  %vm1767_vm0 = vweird.f32 %v4175_v42  ;;  %v1691_v33 = vmul.f32 0.00390625, %v1648_v53 }
 0x2a7   : > { %v4260_v49 = vadd.f32 %v4804_v46, %v3806_v62  ;;  %v4805_v62 = vperm.slane %v3621_v37, 2  ;;  %v3132_v34 = vpop.eup %3131  ;;  %2255 = vst [vmem:[%s4181_s15 + $0x78] sm:$0xff] %v2191_v8  ;;  %v1820_v20 = vsel %vm1819_vm15, %v4179_v52, %v1816_v4  ;;  %v1703_v38 = vadd.f32 %v1687_v22, %v4022_v44 }
 0x2a8   : > { %v4277_v26 = vadd.f32 1e-05, %v1733_v27  ;;  %v1706_v43 = vadd.f32 %v1690_v7, %v4084_v55  ;;  %v2123_v39 = vmul.f32 %v3973_v48, %v1820_v20  ;;  %v2124_v54 = vmul.f32 %v3978_v6, %v1820_v20 }
 0x2a9   : > { %v4273_v51 = vadd.f32 %v4805_v62, %v3812_v57  ;;  %v2125_v14 = vmul.f32 %v3983_v56, %v1820_v20  ;;  %v2126_v57 = vmul.f32 %v3988_v41, %v1820_v20  ;;  %v1764_v32 = vmul.f32 0.5, %v1763_v23  ;;  %v1635_v29 = vpop.permute.xlu1 %1634  ;;  %v4806_v62 = vld [vmem:[#allocation24_spill] sm:$0xff] }
 0x2aa   : > { %v3134_v28 = vpop.eup %3133  ;;  %v1832_v50 = vmul.f32 %v3132_v34, %v4211_v17  ;;  %vm1837_vm1 = vweird.f32 %v4211_v17  ;;  %3135 = vrsqrt.f32 %v4277_v26  ;;  %v2196_v44 = vadd.f32 %v4147_v35, %v2123_v39 }
 0x2ab   : > { %v2197_v48 = vadd.f32 %v4149_v21, %v2124_v54  ;;  %v2198_v6 = vadd.f32 %v4151_v3, %v2125_v14  ;;  %vm1768_vm2 = vweird.f32 %v4246_v40  ;;  %v2199_v56 = vadd.f32 %v4160_v2, %v2126_v57 }
 0x2ac   : > { %v1765_v41 = vsub.f32 1.5, %v1764_v32  ;;  %v1833_v55 = vmul.f32 %v3132_v34, %v1832_v50  ;;  %v1782_v52 = vmul.f32 %v3134_v28, %v4225_v0  ;;  %2260 = vst [vmem:[%s4181_s15 + $0xa0] sm:$0xff] %v2196_v44  ;;  %vm1787_vm3 = vweird.f32 %v4225_v0  ;;  %vm1769_vm5 = vmor %vm1767_vm0, %vm1768_vm2  ;;  %v4813_v0 = vld [vmem:[#allocation23_spill] sm:$0xff] }
 0x2ad   : > { %v1735_v8 = vsub.f32 %v1703_v38, %v4024_v15  ;;  %v1707_v31 = vadd.f32 %v1691_v33, %v4054_v24  ;;  %v1738_v12 = vsub.f32 %v1706_v43, %v4096_v47  ;;  %2261 = vst [vmem:[%s4181_s15 + $0xa8] sm:$0xff] %v2197_v48  ;;  %vm1838_vm4 = vweird.f32 %v3132_v34  ;;  %v1661_v47 = vpop.permute.xlu2 %1660  ;;  %v4807_v38 = vld [vmem:[#allocation25_spill] sm:$0xff] }
 0x2ae   : > { %v1766_v11 = vmul.f32 %v4246_v40, %v1765_v41  ;;  %v1834_v60 = vmul.f32 0.5, %v1833_v55  ;;  %v1783_v46 = vmul.f32 %v3134_v28, %v1782_v52  ;;  %2262 = vst [vmem:[%s4181_s15 + $0xb0] sm:$0xff] %v2198_v6  ;;  %vm1788_vm6 = vweird.f32 %v3134_v28  ;;  %vm1839_vm7 = vmor %vm1837_vm1, %vm1838_vm4  ;;  %v4808_v48 = vld [vmem:[#allocation33_spill] sm:$0xff]  ;;  %v4810_v55 = vld [vmem:[#allocation35_spill] sm:$0xff] }
 0x2af   : > { %v4306_v15 = vadd.f32 1e-05, %v1735_v8  ;;  %v1739_v24 = vsub.f32 %v1707_v31, %v4086_v59  ;;  %v1689_v4 = vmul.f32 0.00390625, %v1635_v29  ;;  %2263 = vst [vmem:[%s4181_s15 + $0xb8] sm:$0xff] %v2199_v56  ;;  %v4313_v23 = vadd.f32 1e-05, %v1738_v12  ;;  %vm1789_vm8 = vmor %vm1787_vm3, %vm1788_vm6 }
 0x2b0   : > { %v4309_v27 = vpop.eup %3135  ;;  %v1770_v22 = vsel %vm1769_vm5, %v4246_v40, %v1766_v11  ;;  %v1835_v53 = vsub.f32 1.5, %v1834_v60  ;;  %v1784_v7 = vmul.f32 0.5, %v1783_v46  ;;  %v1693_v14 = vmul.f32 0.00390625, %v1661_v47  ;;  %v4809_v56 = vld [vmem:[#allocation34_spill] sm:$0xff]  ;;  %v4811_v8 = vld [vmem:[#allocation36_spill] sm:$0xff]  ;;  %v4812_v29 = vld [vmem:[#allocation49_spill] sm:$0xff] }
 0x2b1   : > { %v2103_v33 = vmul.f32 %v3834_v16, %v1770_v22  ;;  %v2104_v42 = vmul.f32 %v3849_v63, %v1770_v22  ;;  %v2105_v20 = vmul.f32 %v4806_v62, %v1770_v22  ;;  %v2106_v59 = vmul.f32 %v4807_v38, %v1770_v22  ;;  %v4817_v38 = vld [vmem:[#allocation8_spill] sm:$0xff] }
 0x2b2   : > { %v1836_v43 = vmul.f32 %v3132_v34, %v1835_v53  ;;  %v1785_v39 = vsub.f32 1.5, %v1784_v7  ;;  %v1802_v54 = vmul.f32 %v4309_v27, %v4277_v26  ;;  %3137 = vrsqrt.f32 %v4306_v15  ;;  %v4814_v7 = vld [vmem:[#allocation26_spill] sm:$0xff] }
 0x2b3   : > { %v2176_v40 = vadd.f32 %v4147_v35, %v2103_v33  ;;  %v2177_v57 = vadd.f32 %v4149_v21, %v2104_v42  ;;  %v2178_v16 = vadd.f32 %v4151_v3, %v2105_v20  ;;  %v2179_v63 = vadd.f32 %v4160_v2, %v2106_v59  ;;  %v4816_v42 = vld [vmem:[#allocation28_spill] sm:$0xff]  ;;  %v1674_v20 = vpop.permute.xlu0 %1673 }
 0x2b4   : > { %v1840_v32 = vsel %vm1839_vm7, %v3132_v34, %v1836_v43  ;;  %v1786_v50 = vmul.f32 %v3134_v28, %v1785_v39  ;;  %v1803_v44 = vmul.f32 %v4309_v27, %v1802_v54  ;;  %v4339_v12 = vadd.f32 1e-05, %v1739_v24  ;;  %v4815_v24 = vld [vmem:[#allocation27_spill] sm:$0xff] }
 0x2b5   : > { %2240 = vst [vmem:[%s4181_s15] sm:$0xff] %v2176_v40  ;;  %v2131_v6 = vmul.f32 %v4808_v48, %v1840_v32  ;;  %v2132_v41 = vmul.f32 %v4809_v56, %v1840_v32  ;;  %v2133_v52 = vmul.f32 %v4810_v55, %v1840_v32  ;;  %v2134_v31 = vmul.f32 %v4811_v8, %v1840_v32 }
 0x2b6   : > { %2241 = vst [vmem:[%s4181_s15 + $0x8] sm:$0xff] %v2177_v57  ;;  %v1790_v17 = vsel %vm1789_vm8, %v3134_v28, %v1786_v50  ;;  %v1804_v34 = vmul.f32 0.5, %v1803_v44  ;;  %v1705_v11 = vadd.f32 %v1689_v4, %v4812_v29  ;;  %vm1808_vm9 = vweird.f32 %v4309_v27  ;;  %v4819_v57 = vld [vmem:[#allocation9_spill] sm:$0xff] }
 0x2b7   : > { %2242 = vst [vmem:[%s4181_s15 + $0x10] sm:$0xff] %v2178_v16  ;;  %v2204_v60 = vadd.f32 %v4147_v35, %v2131_v6  ;;  %v2205_v46 = vadd.f32 %v4149_v21, %v2132_v41  ;;  %v2206_v47 = vadd.f32 %v4151_v3, %v2133_v52  ;;  %v2207_v22 = vadd.f32 %v4160_v2, %v2134_v31  ;;  %v4822_v52 = vld [vmem:[#allocation14_spill] sm:$0xff]  ;;  %v4823_v31 = vld [vmem:[#allocation29_spill] sm:$0xff] }
 0x2b8   : > { %2243 = vst [vmem:[%s4181_s15 + $0x18] sm:$0xff] %v2179_v63  ;;  %v2111_v53 = vmul.f32 %v4813_v0, %v1790_v17  ;;  %v2112_v28 = vmul.f32 %v4814_v7, %v1790_v17  ;;  %v2113_v33 = vmul.f32 %v4815_v24, %v1790_v17  ;;  %v2114_v4 = vmul.f32 %v4816_v42, %v1790_v17  ;;  %v4358_v39 = vpop.eup %3137  ;;  %v1654_v24 = vpop.permute.xlu1 %1653 }
 0x2b9   : > { %2268 = vst [vmem:[%s4181_s15 + $0xe0] sm:$0xff] %v2204_v60  ;;  %v1805_v62 = vsub.f32 1.5, %v1804_v34  ;;  %3139 = vrsqrt.f32 %v4339_v12  ;;  %v4818_v59 = vperm.slane %v3560_v9, 5  ;;  %vm1807_vm10 = vweird.f32 %v4277_v26  ;;  %v4824_v34 = vld [vmem:[#allocation30_spill] sm:$0xff] }
 0x2ba   : > { %2269 = vst [vmem:[%s4181_s15 + $0xe8] sm:$0xff] %v2205_v46  ;;  %v2184_v54 = vadd.f32 %v4147_v35, %v2111_v53  ;;  %v2185_v40 = vadd.f32 %v4149_v21, %v2112_v28  ;;  %v4820_v16 = vperm.slane %v3619_v36, 5  ;;  %v2186_v32 = vadd.f32 %v4151_v3, %v2113_v33  ;;  %vm1809_vm11 = vmor %vm1807_vm10, %vm1808_vm9  ;;  %v4821_v36 = vld [vmem:[#allocation54_spill] sm:$0xff] }
 0x2bb   : > { %v1539_v43 = vadd.f32 %v4818_v59, %v4817_v38  ;;  %2270 = vst [vmem:[%s4181_s15 + $0xf0] sm:$0xff] %v2206_v47  ;;  %v1806_v9 = vmul.f32 %v4309_v27, %v1805_v62  ;;  %v1822_v50 = vmul.f32 %v4358_v39, %v4306_v15  ;;  %3141 = vrsqrt.f32 %v4313_v23  ;;  %v4827_v38 = vld [vmem:[#allocation20_spill] sm:$0xff] }
 0x2bc   : > { %v1572_v63 = vadd.f32 %v4820_v16, %v4819_v57  ;;  %2271 = vst [vmem:[%s4181_s15 + $0xf8] sm:$0xff] %v2207_v22  ;;  %v2187_v44 = vadd.f32 %v4160_v2, %v2114_v4  ;;  %v1737_v26 = vsub.f32 %v1705_v11, %v4821_v36  ;;  %v1709_v48 = vadd.f32 %v1693_v14, %v4187_v18  ;;  %v4825_v11 = vld [vmem:[#allocation31_spill] sm:$0xff]  ;;  %v4826_v14 = vld [vmem:[#allocation32_spill] sm:$0xff] }
 0x2bd   : > { %v1695_v6 = vmul.f32 0.00390625, %v1674_v20  ;;  %2248 = vst [vmem:[%s4181_s15 + $0x40] sm:$0xff] %v2184_v54  ;;  %v1810_v56 = vsel %vm1809_vm11, %v4309_v27, %v1806_v9  ;;  %v1823_v41 = vmul.f32 %v4358_v39, %v1822_v50  ;;  %v4382_v55 = vmul.f32 %v1539_v43, %v1539_v43 }
 0x2be   : > { %v4386_v8 = vmul.f32 %v4822_v52, %v4822_v52  ;;  %2249 = vst [vmem:[%s4181_s15 + $0x48] sm:$0xff] %v2185_v40  ;;  %v2119_v17 = vmul.f32 %v4823_v31, %v1810_v56  ;;  %v2120_v29 = vmul.f32 %v4824_v34, %v1810_v56  ;;  %v2121_v18 = vmul.f32 %v4825_v11, %v1810_v56 }
 0x2bf   : > { %v2122_v60 = vmul.f32 %v4826_v14, %v1810_v56  ;;  %v4393_v46 = vpop.eup %3139  ;;  %2250 = vst [vmem:[%s4181_s15 + $0x50] sm:$0xff] %v2186_v32  ;;  %v1824_v27 = vmul.f32 0.5, %v1823_v41  ;;  %v4396_v47 = vadd.f32 1e-05, %v1737_v26  ;;  %v1741_v22 = vsub.f32 %v1709_v48, %v4213_v1  ;;  %v4829_v26 = vld [vmem:[#allocation38_spill] sm:$0xff]  ;;  %v4831_v41 = vld [vmem:[#allocation40_spill] sm:$0xff] }
 0x2c0   : > { %v1711_v0 = vadd.f32 %v1695_v6, %v4235_v10  ;;  %2251 = vst [vmem:[%s4181_s15 + $0x58] sm:$0xff] %v2187_v44  ;;  %v2192_v53 = vadd.f32 %v4147_v35, %v2119_v17  ;;  %v2193_v7 = vadd.f32 %v4149_v21, %v2120_v29  ;;  %v2194_v28 = vadd.f32 %v4151_v3, %v2121_v18  ;;  %v1680_v10 = vpop.permute.xlu2 %1679  ;;  %v4830_v6 = vld [vmem:[#allocation39_spill] sm:$0xff] }
 0x2c1   : > { %vm1828_vm12 = vweird.f32 %v4358_v39  ;;  %v4405_v33 = vpop.eup %3141  ;;  %v2195_v42 = vadd.f32 %v4160_v2, %v2122_v60  ;;  %v1825_v4 = vsub.f32 1.5, %v1824_v27  ;;  %v1862_v1 = vmul.f32 %v4393_v46, %v4339_v12 }
 0x2c2   : > { %3143 = vrsqrt.f32 %v4396_v47  ;;  %2256 = vst [vmem:[%s4181_s15 + $0x80] sm:$0xff] %v2192_v53  ;;  %vm1827_vm13 = vweird.f32 %v4306_v15  ;;  %v1852_v62 = vmul.f32 %v4405_v33, %v4313_v23  ;;  %v4415_v20 = vadd.f32 1e-05, %v1741_v22 }
 0x2c3   : > { %v4419_v59 = vmul.f32 %v4827_v38, %v4827_v38  ;;  %2257 = vst [vmem:[%s4181_s15 + $0x88] sm:$0xff] %v2193_v7  ;;  %v1826_v43 = vmul.f32 %v4358_v39, %v1825_v4  ;;  %v1863_v54 = vmul.f32 %v4393_v46, %v1862_v1  ;;  %v1743_v40 = vsub.f32 %v1711_v0, %v4255_v61  ;;  %vm1829_vm14 = vmor %vm1827_vm13, %vm1828_vm12  ;;  %v4828_v61 = vld [vmem:[#allocation37_spill] sm:$0xff]  ;;  %v4832_v0 = vld [vmem:[#allocation15_spill] sm:$0xff]  ;;  %v1667_v7 = vpop.permute.xlu1 %1666 }
 0x2c4   : > { %v1692_v57 = vmul.f32 0.00390625, %v1654_v24  ;;  %2258 = vst [vmem:[%s4181_s15 + $0x90] sm:$0xff] %v2194_v28  ;;  %vm1867_vm15 = vweird.f32 %v4339_v12  ;;  %v1853_v15 = vmul.f32 %v4405_v33, %v1852_v62  ;;  %3145 = vrsqrt.f32 %v4415_v20  ;;  %v4833_v4 = vld [vmem:[#allocation41_spill] sm:$0xff] }
 0x2c5   : > { %v1696_v16 = vmul.f32 0.00390625, %v1680_v10  ;;  %2259 = vst [vmem:[%s4181_s15 + $0x98] sm:$0xff] %v2195_v42  ;;  %v1830_v32 = vsel %vm1829_vm14, %v4358_v39, %v1826_v43  ;;  %v1864_v9 = vmul.f32 0.5, %v1863_v54  ;;  %v4433_v50 = vadd.f32 1e-05, %v1743_v40  ;;  %v4834_v10 = vld [vmem:[#allocation42_spill] sm:$0xff] }
 0x2c6   : > { %v4435_v44 = vadd.f32 %v1692_v57, %v1572_v63  ;;  %v2127_v36 = vmul.f32 %v4828_v61, %v1830_v32  ;;  %v2128_v48 = vmul.f32 %v4829_v26, %v1830_v32  ;;  %v2129_v56 = vmul.f32 %v4830_v6, %v1830_v32  ;;  %v4836_v43 = vld [vmem:[#allocation44_spill] sm:$0xff]  ;;  %v4837_v61 = vld [vmem:[#allocation45_spill] sm:$0xff]  ;;  %v4838_v26 = vld [vmem:[#allocation46_spill] sm:$0xff] }
 0x2c7   : > { %v2130_v52 = vmul.f32 %v4831_v41, %v1830_v32  ;;  %v1865_v17 = vsub.f32 1.5, %v1864_v9  ;;  %vm1868_vm0 = vweird.f32 %v4393_v46  ;;  %v1854_v39 = vmul.f32 0.5, %v1853_v15  ;;  %v4839_v6 = vld [vmem:[#allocation47_spill] sm:$0xff] }
 0x2c8   : > { %v4441_v31 = vpop.eup %3143  ;;  %3147 = vrsqrt.f32 %v4433_v50  ;;  %v2200_v63 = vadd.f32 %v4147_v35, %v2127_v36  ;;  %v2201_v34 = vadd.f32 %v4149_v21, %v2128_v48  ;;  %v2202_v29 = vadd.f32 %v4151_v3, %v2129_v56  ;;  %vm1869_vm2 = vmor %vm1867_vm15, %vm1868_vm0  ;;  %v4840_v56 = vld [vmem:[#allocation48_spill] sm:$0xff] }
 0x2c9   : > { %vm1858_vm1 = vweird.f32 %v4405_v33  ;;  %v2203_v11 = vadd.f32 %v4160_v2, %v2130_v52  ;;  %v1866_v18 = vmul.f32 %v4393_v46, %v1865_v17  ;;  %v1855_v14 = vsub.f32 1.5, %v1854_v39 }
 0x2ca   : > { %v1842_v60 = vmul.f32 %v4441_v31, %v4396_v47  ;;  %v4453_v27 = vpop.eup %3145  ;;  %2264 = vst [vmem:[%s4181_s15 + $0xc0] sm:$0xff] %v2200_v63  ;;  %vm1857_vm3 = vweird.f32 %v4313_v23  ;;  %vm1847_vm4 = vweird.f32 %v4396_v47  ;;  %v1740_v22 = vsub.f32 %v4435_v44, %v4382_v55  ;;  %v4835_v55 = vld [vmem:[#allocation43_spill] sm:$0xff]  ;;  %v4842_v47 = vld [vmem:[#allocation50_spill] sm:$0xff] }
 0x2cb   : > { %v4463_v53 = vadd.f32 %v1696_v16, %v4832_v0  ;;  %2265 = vst [vmem:[%s4181_s15 + $0xc8] sm:$0xff] %v2201_v34  ;;  %v1870_v28 = vsel %vm1869_vm2, %v4393_v46, %v1866_v18  ;;  %v1856_v24 = vmul.f32 %v4405_v33, %v1855_v14  ;;  %v1882_v42 = vmul.f32 %v4453_v27, %v4415_v20  ;;  %vm1859_vm5 = vmor %vm1857_vm3, %vm1858_vm1 }
 0x2cc   : > { %v1843_v12 = vmul.f32 %v4441_v31, %v1842_v60  ;;  %2266 = vst [vmem:[%s4181_s15 + $0xd0] sm:$0xff] %v2202_v29  ;;  %v2143_v1 = vmul.f32 %v4833_v4, %v1870_v28  ;;  %v2144_v62 = vmul.f32 %v4834_v10, %v1870_v28  ;;  %v2145_v38 = vmul.f32 %v4835_v55, %v1870_v28  ;;  %v4845_v55 = vld [vmem:[#allocation53_spill] sm:$0xff] }
 0x2cd   : > { %v2146_v54 = vmul.f32 %v4836_v43, %v1870_v28  ;;  %2267 = vst [vmem:[%s4181_s15 + $0xd8] sm:$0xff] %v2203_v11  ;;  %v1860_v40 = vsel %vm1859_vm5, %v4405_v33, %v1856_v24  ;;  %v1883_v15 = vmul.f32 %v4453_v27, %v1882_v42  ;;  %v1694_v16 = vmul.f32 0.00390625, %v1667_v7  ;;  %v4841_v28 = vld [vmem:[#allocation21_spill] sm:$0xff] }
 0x2ce   : > { %v4480_v46 = vpop.eup %3147  ;;  %v1844_v57 = vmul.f32 0.5, %v1843_v12  ;;  %v2216_v32 = vadd.f32 %v4147_v35, %v2143_v1  ;;  %v2217_v9 = vadd.f32 %v4149_v21, %v2144_v62  ;;  %v2218_v44 = vadd.f32 %v4151_v3, %v2145_v38  ;;  %v4843_v1 = vld [vmem:[#allocation51_spill] sm:$0xff] }
 0x2cf   : > { %v2219_v23 = vadd.f32 %v4160_v2, %v2146_v54  ;;  %v2139_v36 = vmul.f32 %v4837_v61, %v1860_v40  ;;  %v2140_v48 = vmul.f32 %v4838_v26, %v1860_v40  ;;  %v2141_v33 = vmul.f32 %v4839_v6, %v1860_v40 }
 0x2d0   : > { %v2142_v41 = vmul.f32 %v4840_v56, %v1860_v40  ;;  %2280 = vst [vmem:[%s4181_s15 + $0x140] sm:$0xff] %v2216_v32  ;;  %v1845_v52 = vsub.f32 1.5, %v1844_v57  ;;  %vm1848_vm6 = vweird.f32 %v4441_v31  ;;  %v1884_v17 = vmul.f32 0.5, %v1883_v15 }
 0x2d1   : > { %v1902_v39 = vmul.f32 %v4480_v46, %v4433_v50  ;;  %2281 = vst [vmem:[%s4181_s15 + $0x148] sm:$0xff] %v2217_v9  ;;  %v2212_v63 = vadd.f32 %v4147_v35, %v2139_v36  ;;  %v2213_v34 = vadd.f32 %v4149_v21, %v2140_v48  ;;  %v2214_v29 = vadd.f32 %v4151_v3, %v2141_v33  ;;  %vm1849_vm8 = vmor %vm1847_vm4, %vm1848_vm6 }
 0x2d2   : > { %vm1888_vm7 = vweird.f32 %v4453_v27  ;;  %2282 = vst [vmem:[%s4181_s15 + $0x150] sm:$0xff] %v2218_v44  ;;  %v1846_v11 = vmul.f32 %v4441_v31, %v1845_v52  ;;  %v1885_v18 = vsub.f32 1.5, %v1884_v17  ;;  %v4505_v60 = vadd.f32 1e-05, %v1740_v22 }
 0x2d3   : > { %v1903_v14 = vmul.f32 %v4480_v46, %v1902_v39  ;;  %2283 = vst [vmem:[%s4181_s15 + $0x158] sm:$0xff] %v2219_v23  ;;  %v2215_v0 = vadd.f32 %v4160_v2, %v2142_v41  ;;  %vm1887_vm9 = vweird.f32 %v4415_v20  ;;  %v1744_v7 = vsub.f32 %v4463_v53, %v4386_v8  ;;  %v4844_v20 = vld [vmem:[#allocation52_spill] sm:$0xff] }
 0x2d4   : > { %v1710_v24 = vadd.f32 %v1694_v16, %v4841_v28  ;;  %2276 = vst [vmem:[%s4181_s15 + $0x120] sm:$0xff] %v2212_v63  ;;  %v1850_v22 = vsel %vm1849_vm8, %v4441_v31, %v1846_v11  ;;  %v1886_v12 = vmul.f32 %v4453_v27, %v1885_v18  ;;  %3149 = vrsqrt.f32 %v4505_v60  ;;  %vm1889_vm10 = vmor %vm1887_vm9, %vm1888_vm7  ;;  %v4848_v11 = vld [vmem:[#allocation22_spill] sm:$0xff] }
 0x2d5   : > { %v1904_v42 = vmul.f32 0.5, %v1903_v14  ;;  %2277 = vst [vmem:[%s4181_s15 + $0x128] sm:$0xff] %v2213_v34  ;;  %v2135_v4 = vmul.f32 %v4842_v47, %v1850_v22  ;;  %v2136_v10 = vmul.f32 %v4843_v1, %v1850_v22  ;;  %v2137_v62 = vmul.f32 %v4844_v20, %v1850_v22 }
 0x2d6   : > { %v2138_v8 = vmul.f32 %v4845_v55, %v1850_v22  ;;  %2278 = vst [vmem:[%s4181_s15 + $0x130] sm:$0xff] %v2214_v29  ;;  %v1890_v31 = vsel %vm1889_vm10, %v4453_v27, %v1886_v12  ;;  %vm1908_vm11 = vweird.f32 %v4480_v46  ;;  %v4531_v38 = vadd.f32 1e-05, %v1744_v7  ;;  %v4847_v29 = vld [vmem:[#allocation10_spill] sm:$0xff] }
 0x2d7   : > { %v1905_v53 = vsub.f32 1.5, %v1904_v42  ;;  %2279 = vst [vmem:[%s4181_s15 + $0x138] sm:$0xff] %v2215_v0  ;;  %v2208_v43 = vadd.f32 %v4147_v35, %v2135_v4  ;;  %v2209_v54 = vadd.f32 %v4149_v21, %v2136_v10  ;;  %v2210_v40 = vadd.f32 %v4151_v3, %v2137_v62  ;;  %v4850_v0 = vld [vmem:[#allocation11_spill] sm:$0xff]  ;;  %v4854_v42 = vld [vmem:[#allocation13_spill] sm:$0xff] }
 0x2d8   : > { %v2211_v57 = vadd.f32 %v4160_v2, %v2138_v8  ;;  %v2151_v15 = vmul.f32 %v4192_v30, %v1890_v31  ;;  %v2152_v27 = vmul.f32 %v4197_v58, %v1890_v31  ;;  %v2153_v16 = vmul.f32 %v4202_v19, %v1890_v31 }
 0x2d9   : > { %v2154_v32 = vmul.f32 %v4218_v13, %v1890_v31  ;;  %2272 = vst [vmem:[%s4181_s15 + $0x100] sm:$0xff] %v2208_v43  ;;  %v1906_v9 = vmul.f32 %v4480_v46, %v1905_v53  ;;  %vm1907_vm12 = vweird.f32 %v4433_v50  ;;  %3151 = vrsqrt.f32 %v4531_v38 }
 0x2da   : > { %v1742_v44 = vsub.f32 %v1710_v24, %v4419_v59  ;;  %v3150_v23 = vpop.eup %3149  ;;  %2273 = vst [vmem:[%s4181_s15 + $0x108] sm:$0xff] %v2209_v54  ;;  %v2224_v30 = vadd.f32 %v4147_v35, %v2151_v15  ;;  %v2225_v58 = vadd.f32 %v4149_v21, %v2152_v27  ;;  %v2226_v19 = vadd.f32 %v4151_v3, %v2153_v16  ;;  %vm1909_vm13 = vmor %vm1907_vm12, %vm1908_vm11  ;;  %v4852_v24 = vld [vmem:[#allocation12_spill] sm:$0xff] }
 0x2db   : > { %v4846_v13 = vperm.slane %v3621_v37, 3  ;;  %2274 = vst [vmem:[%s4181_s15 + $0x110] sm:$0xff] %v2210_v40  ;;  %v2227_v59 = vadd.f32 %v4160_v2, %v2154_v32  ;;  %v1910_v61 = vsel %vm1909_vm13, %v4480_v46, %v1906_v9  ;;  %v1872_v36 = vmul.f32 %v3150_v23, %v4505_v60 }
 0x2dc   : > { %v4560_v26 = vadd.f32 1e-05, %v1742_v44  ;;  %2275 = vst [vmem:[%s4181_s15 + $0x118] sm:$0xff] %v2211_v57  ;;  %v2159_v48 = vmul.f32 %v4240_v5, %v1910_v61  ;;  %v2160_v6 = vmul.f32 %v4260_v49, %v1910_v61  ;;  %v2161_v37 = vmul.f32 %v4273_v51, %v1910_v61 }
 0x2dd   : > { %v2098_v50 = vadd.f32 %v4846_v13, %v3815_v45  ;;  %2288 = vst [vmem:[%s4181_s15 + $0x180] sm:$0xff] %v2224_v30  ;;  %v1873_v33 = vmul.f32 %v3150_v23, %v1872_v36  ;;  %vm1878_vm14 = vweird.f32 %v3150_v23  ;;  %vm1877_vm15 = vweird.f32 %v4505_v60  ;;  %v4859_v13 = vld [vmem:[#allocation18_spill] sm:$0xff] }
 0x2de   : > { %3153 = vrsqrt.f32 %v4560_v26  ;;  %2289 = vst [vmem:[%s4181_s15 + $0x188] sm:$0xff] %v2225_v58  ;;  %v2232_v46 = vadd.f32 %v4147_v35, %v2159_v48  ;;  %v2233_v56 = vadd.f32 %v4149_v21, %v2160_v6  ;;  %v2234_v5 = vadd.f32 %v4151_v3, %v2161_v37  ;;  %vm1879_vm0 = vmor %vm1877_vm15, %vm1878_vm14  ;;  %v4858_v58 = vld [vmem:[#allocation17_spill] sm:$0xff] }
 0x2df   : > { %v2162_v45 = vmul.f32 %v2098_v50, %v1910_v61  ;;  %v3152_v41 = vpop.eup %3151  ;;  %2290 = vst [vmem:[%s4181_s15 + $0x190] sm:$0xff] %v2226_v19  ;;  %v1874_v49 = vmul.f32 0.5, %v1873_v33  ;;  %v4849_v18 = vperm.slane %v4848_v11, 0  ;;  %v4851_v7 = vperm.slane %v4848_v11, 1  ;;  %v4860_v50 = vld [vmem:[#allocation19_spill] sm:$0xff] }
 0x2e0   : > { %2291 = vst [vmem:[%s4181_s15 + $0x198] sm:$0xff] %v2227_v59  ;;  %v1912_v52 = vmul.f32 %v3152_v41, %v4531_v38  ;;  %v4853_v22 = vperm.slane %v4848_v11, 2  ;;  %v4855_v47 = vperm.slane %v4848_v11, 3  ;;  %vm1918_vm1 = vweird.f32 %v3152_v41 }
 0x2e1   : > { %v2235_v51 = vadd.f32 %v4160_v2, %v2162_v45  ;;  %2296 = vst [vmem:[%s4181_s15 + $0x1c0] sm:$0xff] %v2232_v46  ;;  %v1875_v17 = vsub.f32 1.5, %v1874_v49  ;;  %v2083_v14 = vadd.f32 %v4849_v18, %v4847_v29  ;;  %v2084_v28 = vadd.f32 %v4851_v7, %v4850_v0 }
 0x2e2   : > { %2297 = vst [vmem:[%s4181_s15 + $0x1c8] sm:$0xff] %v2233_v56  ;;  %v1913_v39 = vmul.f32 %v3152_v41, %v1912_v52  ;;  %v2085_v12 = vadd.f32 %v4853_v22, %v4852_v24  ;;  %v2086_v4 = vadd.f32 %v4855_v47, %v4854_v42  ;;  %vm1917_vm2 = vweird.f32 %v4531_v38 }
 0x2e3   : > { %2298 = vst [vmem:[%s4181_s15 + $0x1d0] sm:$0xff] %v2234_v5  ;;  %v1876_v34 = vmul.f32 %v3150_v23, %v1875_v17  ;;  %vm1919_vm3 = vmor %vm1917_vm2, %vm1918_vm1  ;;  %v4856_v9 = vperm.slane %v3787_v25, 0  ;;  %vm1897_vm5 = vweird.f32 %v4560_v26  ;;  %v4861_v36 = vperm.slane %v3787_v25, 1 }
 0x2e4   : > { %v3154_v63 = vpop.eup %3153  ;;  %2299 = vst [vmem:[%s4181_s15 + $0x1d8] sm:$0xff] %v2235_v51  ;;  %v1914_v1 = vmul.f32 0.5, %v1913_v39  ;;  %v4862_v6 = vperm.slane %v3787_v25, 2 }
 0x2e5   : > { %v1892_v60 = vmul.f32 %v3154_v63, %v4560_v26  ;;  %v1880_v10 = vsel %vm1879_vm0, %v3150_v23, %v1876_v34  ;;  %vm1898_vm4 = vweird.f32 %v3154_v63  ;;  %v2091_v44 = vadd.f32 %v4856_v9, %v4847_v29  ;;  %v4857_v23 = vld [vmem:[#allocation16_spill] sm:$0xff] }
 0x2e6   : > { %v2147_v20 = vmul.f32 %v2083_v14, %v1880_v10  ;;  %v2148_v62 = vmul.f32 %v2084_v28, %v1880_v10  ;;  %v2149_v55 = vmul.f32 %v2085_v12, %v1880_v10  ;;  %v2150_v8 = vmul.f32 %v2086_v4, %v1880_v10  ;;  %vm1899_vm6 = vmor %vm1897_vm5, %vm1898_vm4 }
 0x2e7   : > { %v1915_v31 = vsub.f32 1.5, %v1914_v1  ;;  %v1893_v53 = vmul.f32 %v3154_v63, %v1892_v60  ;;  %v2092_v48 = vadd.f32 %v4861_v36, %v4850_v0  ;;  %v2093_v37 = vadd.f32 %v4862_v6, %v4852_v24 }
 0x2e8   : > { %v2220_v43 = vadd.f32 %v4147_v35, %v2147_v20  ;;  %v2221_v54 = vadd.f32 %v4149_v21, %v2148_v62  ;;  %v2222_v40 = vadd.f32 %v4151_v3, %v2149_v55  ;;  %v2223_v57 = vadd.f32 %v4160_v2, %v2150_v8 }
 0x2e9   : > { %v1916_v15 = vmul.f32 %v3152_v41, %v1915_v31  ;;  %v1894_v27 = vmul.f32 0.5, %v1893_v53  ;;  %v4863_v26 = vperm.slane %v3787_v25, 3 }
 0x2ea   : > { %2284 = vst [vmem:[%s4181_s15 + $0x160] sm:$0xff] %v2220_v43 }
 0x2eb   : > { %2285 = vst [vmem:[%s4181_s15 + $0x168] sm:$0xff] %v2221_v54  ;;  %v1920_v16 = vsel %vm1919_vm3, %v3152_v41, %v1916_v15  ;;  %v1895_v32 = vsub.f32 1.5, %v1894_v27  ;;  %v2094_v56 = vadd.f32 %v4863_v26, %v4854_v42 }
 0x2ec   : > { %2286 = vst [vmem:[%s4181_s15 + $0x170] sm:$0xff] %v2222_v40  ;;  %v2163_v30 = vmul.f32 %v4857_v23, %v1920_v16  ;;  %v2164_v19 = vmul.f32 %v4858_v58, %v1920_v16  ;;  %v2165_v38 = vmul.f32 %v4859_v13, %v1920_v16  ;;  %v2166_v59 = vmul.f32 %v4860_v50, %v1920_v16 }
 0x2ed   : > { %2287 = vst [vmem:[%s4181_s15 + $0x178] sm:$0xff] %v2223_v57  ;;  %v1896_v61 = vmul.f32 %v3154_v63, %v1895_v32 }
 0x2ee   : > { %v2236_v45 = vadd.f32 %v4147_v35, %v2163_v30  ;;  %v2237_v33 = vadd.f32 %v4149_v21, %v2164_v19  ;;  %v2238_v46 = vadd.f32 %v4151_v3, %v2165_v38  ;;  %v2239_v41 = vadd.f32 %v4160_v2, %v2166_v59 }
 0x2ef   : > { %v1900_v5 = vsel %vm1899_vm6, %v3154_v63, %v1896_v61 }
 0x2f0   : > { %2300 = vst [vmem:[%s4181_s15 + $0x1e0] sm:$0xff] %v2236_v45  ;;  %v2155_v49 = vmul.f32 %v2091_v44, %v1900_v5  ;;  %v2156_v51 = vmul.f32 %v2092_v48, %v1900_v5  ;;  %v2157_v52 = vmul.f32 %v2093_v37, %v1900_v5  ;;  %v2158_v17 = vmul.f32 %v2094_v56, %v1900_v5 }
 0x2f1   : > { %2301 = vst [vmem:[%s4181_s15 + $0x1e8] sm:$0xff] %v2237_v33 }
 0x2f2   : > { %2302 = vst [vmem:[%s4181_s15 + $0x1f0] sm:$0xff] %v2238_v46  ;;  %v2228_v25 = vadd.f32 %v4147_v35, %v2155_v49  ;;  %v2229_v39 = vadd.f32 %v4149_v21, %v2156_v51  ;;  %v2230_v63 = vadd.f32 %v4151_v3, %v2157_v52  ;;  %v2231_v34 = vadd.f32 %v4160_v2, %v2158_v17 }
 0x2f3   : > { %2303 = vst [vmem:[%s4181_s15 + $0x1f8] sm:$0xff] %v2239_v41 }
 0x2f4   : > { %2292 = vst [vmem:[%s4181_s15 + $0x1a0] sm:$0xff] %v2228_v25 }
 0x2f5   : > { %2293 = vst [vmem:[%s4181_s15 + $0x1a8] sm:$0xff] %v2229_v39 }
 0x2f6   : > { %2294 = vst [vmem:[%s4181_s15 + $0x1b0] sm:$0xff] %v2230_v63 }
 0x2f7   : > { %2295 = vst [vmem:[%s4181_s15 + $0x1b8] sm:$0xff] %v2231_v34 }
 0x2f8   : > { %3212 = shalt.err (!%p3209_p8)
}
 0x2f9   : > { %s3257_s13 = smov 512   ;;  %s3258_s15 = smov 32  }
 0x2fa   : > { %3057 = dma.vmem_to_hbm [thread:$0]  (%p3332_p5), %s2319_s19, 8192, %s2321_s20, %s2305_s26, %s3257_s13, %s3257_s13, %s3258_s15  }
 0x2fb PF: > { %p3069_p9 = scmp.ge.s32.totalorder %s3251_s24, 2  ;;  %s2335_s16 = sand.u32 1, %s3239_s21  }
 0x2fc   : > { %s2336_s25 = scalar_lea.sflag [#allocation4], %s2335_s16 }
 0x2fd   : > { %p3064_p10 = pnand %p3069_p9, %p3336_p6 }
 0x2ff   : > { %p3065_p11 = pneg %p3064_p10 }
 0x301   : > { %3234 = dma.done.wait (%p3065_p11), %s2336_s25, 8192  }
 0x302   : > { %3236 = vsyncadd (%p3065_p11), %s2336_s25, 4294959104  ;;  %p17_p12 = scmp.ge.s32.totalorder %s3319_s27, 4   ;;  %s4864_s21 = smov %s3243_s22 }
 0x303   : > { %s4865_s22 = smov %s3247_s23  ;;  %s4866_s23 = smov %s3330_s30 }
 0x304   : > { %s4867_s24 = smov %s3319_s27  ;;  %19 = sbr.rel (!%p17_p12) target bundleno = 4 (0x4), region = 84 }
 0x309   :  { %2342 = vsyncpa [#allocation3], 1 }
 0x30a   :  { %2344 = vsyncpa [#allocation3 + $0x1], 1 }
 0x30b   :  { %2345 = vsyncpa [#allocation4], 1 }
 0x30c   :  { %2347 = vsyncpa [#allocation4 + $0x1], 1 }

</bundles_post_ra>
